<compile_context>
chip_gen: v7x
topology: tpu7x:2x2x1
jax: 0.10.0
libtpu: 0.0.40
codegen_flags: <defaults>
</compile_context>

<pallas_src>
import math
from functools import partial

import jax
import jax.numpy as jnp
from jax.experimental import pallas as pl
from jax.experimental.pallas import tpu as pltpu


# ----------------------------- in-kernel helpers -----------------------------

def _layer_norm(y, gamma, beta, eps):
    u = jnp.mean(y, axis=-1, keepdims=True)
    d = y - u
    s = jnp.mean(d * d, axis=-1, keepdims=True)
    return gamma * (d * jax.lax.rsqrt(s + eps)) + beta


def _erf_approx(x):
    # Abramowitz & Stegun 7.1.26, max abs error 1.5e-7.  Uses only exp / mul /
    # add / div / where, all of which have Mosaic lowerings.
    a1, a2, a3, a4, a5 = (0.254829592, -0.284496736, 1.421413741,
                          -1.453152027, 1.061405429)
    p = 0.3275911
    ax = jnp.abs(x)
    t = 1.0 / (1.0 + p * ax)
    poly = ((((a5 * t + a4) * t + a3) * t + a2) * t + a1) * t
    y = 1.0 - poly * jnp.exp(-ax * ax)
    return jnp.where(x >= 0, y, -y)


def _gelu(x):
    # matches torch: x * 0.5 * (1 + erf(x / sqrt(2)))
    return x * 0.5 * (1.0 + _erf_approx(x * (1.0 / math.sqrt(2.0))))


# --------------------------------- kernel ------------------------------------

def bert_layer_kernel(
    x_ref, mask_ref,
    wqkv_ref, bqkv_ref, wo_ref, bo_ref, g1_ref, be1_ref,
    wi_ref, bi_ref, wo2_ref, bo2_ref, g2_ref, be2_ref,
    out_ref,
    *, num_heads, head_size, eps, compute_dtype,
):
    f32 = jnp.float32
    x = x_ref[0].astype(f32)                 # (S, H)
    S, H = x.shape
    mask = mask_ref[0].astype(f32)           # (1, S) additive mask over keys

    # --- fused, head-batched QKV projection (one batched MXU matmul) ---
    xb = jnp.broadcast_to(x.astype(compute_dtype)[None], (num_heads, S, H))
    qkv = jnp.einsum("hsk,hkc->hsc", xb, wqkv_ref[...],
                     preferred_element_type=f32) + bqkv_ref[...]   # (nh,S,3dH)
    q = qkv[:, :, :head_size]
    k = qkv[:, :, head_size:2 * head_size]
    v = qkv[:, :, 2 * head_size:]

    # --- attention scores: contract last dims, heads batched (no K transpose) -
    scores = jnp.einsum("hqd,hkd->hqk",
                        q.astype(compute_dtype), k.astype(compute_dtype),
                        preferred_element_type=f32)                # (nh,S,S)
    scores = scores * (1.0 / math.sqrt(head_size)) + mask

    # --- numerically stable softmax (EUP approx reciprocal) ---
    m = jnp.max(scores, axis=-1, keepdims=True)
    e = jnp.exp(scores - m)
    denom = jnp.sum(e, axis=-1, keepdims=True)
    probs = e * pl.reciprocal(denom, approx=True)                  # (nh,S,S)

    # --- context and output projection ---
    ctx = jnp.einsum("hqk,hkd->hqd",
                     probs.astype(compute_dtype), v.astype(compute_dtype),
                     preferred_element_type=f32)                   # (nh,S,dH)
    proj_h = jnp.einsum("hsd,hdj->hsj",
                        ctx.astype(compute_dtype), wo_ref[...],
                        preferred_element_type=f32)                # (nh,S,H)
    proj = jnp.sum(proj_h, axis=0) + bo_ref[...]                   # (S,H)

    attn_out = _layer_norm(proj + x, g1_ref[...], be1_ref[...], eps)

    # --- feed-forward: dense -> GELU -> dense, residual, LayerNorm ---
    inter = jnp.dot(attn_out.astype(compute_dtype), wi_ref[...],
                    preferred_element_type=f32) + bi_ref[...]      # (S,I)
    inter = _gelu(inter)
    ffn = jnp.dot(inter.astype(compute_dtype), wo2_ref[...],
                  preferred_element_type=f32) + bo2_ref[...]       # (S,H)

    out = _layer_norm(ffn + attn_out, g2_ref[...], be2_ref[...], eps)
    out_ref[0] = out.astype(out_ref.dtype)


# --------------------------------- wrapper -----------------------------------

def bert_layer(hidden_states, attention_mask, params, *,
               num_heads, eps=1e-12, compute_dtype=jnp.float32):
    (wq, bq, wk, bk, wv, bv, wo, bo, g1, be1,
     wi, bi, wo2, bo2, g2, be2) = params
    B, S, H = hidden_states.shape
    dH = H // num_heads
    i_size = wi.shape[1]
    cdt = compute_dtype

    # Rearrange weights OUTSIDE the kernel (free) into head-batched layouts so
    # the kernel never has to transpose / re-split the lane dimension.
    def heads_out(w):  # (H, H_out=nh*dH) -> (nh, H, dH)
        return w.reshape(H, num_heads, dH).transpose(1, 0, 2)

    wqkv = jnp.concatenate([heads_out(wq), heads_out(wk), heads_out(wv)],
                           axis=-1).astype(cdt)                    # (nh, H, 3dH)
    bqkv = jnp.concatenate([b.reshape(num_heads, 1, dH)
                            for b in (bq, bk, bv)],
                           axis=-1).astype(jnp.float32)            # (nh, 1, 3dH)
    wo_h = wo.reshape(num_heads, dH, H).astype(cdt)                # (nh, dH, H)

    row = lambda b: b.reshape(1, -1).astype(jnp.float32)
    b_attn, g1r, be1r = row(bo), row(g1), row(be1)
    b_i, b_ffn, g2r, be2r = row(bi), row(bo2), row(g2), row(be2)
    wi_c, wo2_c = wi.astype(cdt), wo2.astype(cdt)

    mask3 = attention_mask.reshape(B, 1, S).astype(jnp.float32)    # (B, 1, S)

    kernel = partial(bert_layer_kernel, num_heads=num_heads,
                     head_size=dH, eps=eps, compute_dtype=cdt)

    def const(shape):  # whole-array block, constant index map
        n = len(shape)
        return pl.BlockSpec(shape, lambda b, _n=n: (0,) * _n)

    grid_spec = pltpu.PrefetchScalarGridSpec(
        num_scalar_prefetch=0,
        grid=(B,),
        in_specs=[
            pl.BlockSpec((1, S, H), lambda b: (b, 0, 0)),          # hidden
            pl.BlockSpec((1, 1, S), lambda b: (b, 0, 0)),          # mask
            const((num_heads, H, 3 * dH)),                         # Wqkv
            const((num_heads, 1, 3 * dH)),                         # bqkv
            const((num_heads, dH, H)),                             # Wo (heads)
            const((1, H)), const((1, H)), const((1, H)),           # bo, g1, be1
            const((H, i_size)), const((1, i_size)),                # W_inter, b
            const((i_size, H)), const((1, H)),                     # W_out, b
            const((1, H)), const((1, H)),                          # g2, be2
        ],
        out_specs=pl.BlockSpec((1, S, H), lambda b: (b, 0, 0)),
    )

    return pl.pallas_call(
        kernel,
        out_shape=jax.ShapeDtypeStruct((B, S, H), hidden_states.dtype),
        grid_spec=grid_spec,
        compiler_params=pltpu.CompilerParams(
            dimension_semantics=("parallel",),
            vmem_limit_bytes=64 * 1024 * 1024,
        ),
    )(hidden_states, mask3, wqkv, bqkv, wo_h, b_attn, g1r, be1r,
      wi_c, b_i, wo2_c, b_ffn, g2r, be2r)


# ------------------------------ pure-JAX reference ----------------------------

def bert_layer_reference(hidden_states, attention_mask, params, num_heads,
                         eps=1e-12):
    (wq, bq, wk, bk, wv, bv, wo, bo, g1, be1,
     wi, bi, wo2, bo2, g2, be2) = params
    B, S, H = hidden_states.shape
    dH = H // num_heads

    def split(t):
        return t.reshape(B, S, num_heads, dH).transpose(0, 2, 1, 3)

    q = split(hidden_states @ wq + bq)
    k = split(hidden_states @ wk + bk)
    v = split(hidden_states @ wv + bv)

    scores = jnp.einsum("bhqd,bhkd->bhqk", q, k) / math.sqrt(dH)
    scores = scores + attention_mask.reshape(B, 1, 1, S)
    probs = jax.nn.softmax(scores, axis=-1)
    ctx = jnp.einsum("bhqk,bhkd->bhqd", probs, v)
    ctx = ctx.transpose(0, 2, 1, 3).reshape(B, S, H)

    def ln(y, g, b):
        u = y.mean(-1, keepdims=True)
        s = ((y - u) ** 2).mean(-1, keepdims=True)
        return g * (y - u) / jnp.sqrt(s + eps) + b

    attn = ln(ctx @ wo + bo + hidden_states, g1, be1)
    inter = attn @ wi + bi
    inter = inter * 0.5 * (1.0 + jax.scipy.special.erf(inter / math.sqrt(2.0)))
    return ln(inter @ wo2 + bo2 + attn, g2, be2)


# ----------------------------------- main -------------------------------------

if __name__ == "__main__":
    B, S, H, NH, I_SZ = 2, 8, 32, 4, 64

    key = jax.random.PRNGKey(0)
    ks = jax.random.split(key, 18)

    hidden_states = jax.random.normal(ks[0], (B, S, H), dtype=jnp.float32)
    # BERT-style additive mask: 0 for attended positions, -10000 for padded
    pad = (jax.random.uniform(ks[1], (B, S)) < 0.2).astype(jnp.float32)
    attention_mask = pad * (-10000.0)

    sc = 0.02
    w = lambda k, shp: sc * jax.random.normal(k, shp, dtype=jnp.float32)
    wq, wk, wv, wo = w(ks[2], (H, H)), w(ks[3], (H, H)), w(ks[4], (H, H)), w(ks[5], (H, H))
    bq, bk, bv, bo = w(ks[6], (H,)), w(ks[7], (H,)), w(ks[8], (H,)), w(ks[9], (H,))
    wi, bi = w(ks[10], (H, I_SZ)), w(ks[11], (I_SZ,))
    wo2, bo2 = w(ks[12], (I_SZ, H)), w(ks[13], (H,))
    g1 = 1.0 + 0.1 * jax.random.normal(ks[14], (H,), dtype=jnp.float32)
    be1 = 0.1 * jax.random.normal(ks[15], (H,), dtype=jnp.float32)
    g2 = 1.0 + 0.1 * jax.random.normal(ks[16], (H,), dtype=jnp.float32)
    be2 = 0.1 * jax.random.normal(ks[17], (H,), dtype=jnp.float32)

    params = (wq, bq, wk, bk, wv, bv, wo, bo, g1, be1,
              wi, bi, wo2, bo2, g2, be2)

    ref = bert_layer_reference(hidden_states, attention_mask, params, NH)

    # f32 matmul path (tight check)
    out_f32 = jax.block_until_ready(
        bert_layer(hidden_states, attention_mask, params,
                   num_heads=NH, compute_dtype=jnp.float32))
    assert out_f32.shape == (B, S, H)
    assert jnp.allclose(out_f32, ref, atol=1e-3, rtol=1e-3), \
        "f32 kernel mismatch vs reference"

    # bf16 matmul path (f32 accumulation), looser check
    out_bf16 = jax.block_until_ready(
        bert_layer(hidden_states, attention_mask, params,
                   num_heads=NH, compute_dtype=jnp.bfloat16))
    assert jnp.allclose(out_bf16, ref, atol=2e-2, rtol=2e-2), \
        "bf16-matmul kernel mismatch vs reference"

    print("KERNEL_OK")
</pallas_src>

<mosaic_0001>
module attributes {stable_mosaic.version = 11 : i64} {
  func.func @bert_layer_kernel(%arg0: i32, %arg1: memref<1x8x32xf32, #tpu.memory_space<vmem>>, %arg2: memref<1x1x8xf32, #tpu.memory_space<vmem>>, %arg3: memref<4x32x24xf32, #tpu.memory_space<vmem>>, %arg4: memref<4x1x24xf32, #tpu.memory_space<vmem>>, %arg5: memref<4x8x32xf32, #tpu.memory_space<vmem>>, %arg6: memref<1x32xf32, #tpu.memory_space<vmem>>, %arg7: memref<1x32xf32, #tpu.memory_space<vmem>>, %arg8: memref<1x32xf32, #tpu.memory_space<vmem>>, %arg9: memref<32x64xf32, #tpu.memory_space<vmem>>, %arg10: memref<1x64xf32, #tpu.memory_space<vmem>>, %arg11: memref<64x32xf32, #tpu.memory_space<vmem>>, %arg12: memref<1x32xf32, #tpu.memory_space<vmem>>, %arg13: memref<1x32xf32, #tpu.memory_space<vmem>>, %arg14: memref<1x32xf32, #tpu.memory_space<vmem>>, %arg15: memref<1x8x32xf32, #tpu.memory_space<vmem>>) attributes {dimension_semantics = [#tpu.dimension_semantics<parallel>], iteration_bounds = array<i64: 2>, scalar_prefetch = 0 : i64, scratch_operands = 0 : i64, tpu.core_type = #tpu.core_type<tc>, window_params = [{transform_indices = @transform_0, window_bounds = array<i64: 1, 8, 32>}, {transform_indices = @transform_1, window_bounds = array<i64: 1, 1, 8>}, {pipeline_mode = #tpu.pipeline_mode<synchronous>, transform_indices = @transform_2, window_bounds = array<i64: 4, 32, 24>}, {pipeline_mode = #tpu.pipeline_mode<synchronous>, transform_indices = @transform_3, window_bounds = array<i64: 4, 1, 24>}, {pipeline_mode = #tpu.pipeline_mode<synchronous>, transform_indices = @transform_4, window_bounds = array<i64: 4, 8, 32>}, {pipeline_mode = #tpu.pipeline_mode<synchronous>, transform_indices = @transform_5, window_bounds = array<i64: 1, 32>}, {pipeline_mode = #tpu.pipeline_mode<synchronous>, transform_indices = @transform_6, window_bounds = array<i64: 1, 32>}, {pipeline_mode = #tpu.pipeline_mode<synchronous>, transform_indices = @transform_7, window_bounds = array<i64: 1, 32>}, {pipeline_mode = #tpu.pipeline_mode<synchronous>, transform_indices = @transform_8, window_bounds = array<i64: 32, 64>}, {pipeline_mode = #tpu.pipeline_mode<synchronous>, transform_indices = @transform_9, window_bounds = array<i64: 1, 64>}, {pipeline_mode = #tpu.pipeline_mode<synchronous>, transform_indices = @transform_10, window_bounds = array<i64: 64, 32>}, {pipeline_mode = #tpu.pipeline_mode<synchronous>, transform_indices = @transform_11, window_bounds = array<i64: 1, 32>}, {pipeline_mode = #tpu.pipeline_mode<synchronous>, transform_indices = @transform_12, window_bounds = array<i64: 1, 32>}, {pipeline_mode = #tpu.pipeline_mode<synchronous>, transform_indices = @transform_13, window_bounds = array<i64: 1, 32>}, {transform_indices = @transform_14, window_bounds = array<i64: 1, 8, 32>}]} {
    %c0 = arith.constant 0 : index
    %c0_0 = arith.constant 0 : index
    %c0_1 = arith.constant 0 : index
    %0 = vector.load %arg1[%c0, %c0_0, %c0_1] : memref<1x8x32xf32, #tpu.memory_space<vmem>>, vector<1x8x32xf32>
    %1 = vector.shape_cast %0 : vector<1x8x32xf32> to vector<8x32xf32>
    %c0_2 = arith.constant 0 : index
    %c0_3 = arith.constant 0 : index
    %c0_4 = arith.constant 0 : index
    %2 = vector.load %arg2[%c0_2, %c0_3, %c0_4] : memref<1x1x8xf32, #tpu.memory_space<vmem>>, vector<1x1x8xf32>
    %3 = vector.shape_cast %2 : vector<1x1x8xf32> to vector<1x8xf32>
    %4 = vector.shape_cast %1 : vector<8x32xf32> to vector<1x8x32xf32>
    %5 = vector.shape_cast %4 : vector<1x8x32xf32> to vector<1x8x32xf32>
    %6 = vector.broadcast %5 : vector<1x8x32xf32> to vector<4x8x32xf32>
    %c0_5 = arith.constant 0 : index
    %c0_6 = arith.constant 0 : index
    %c0_7 = arith.constant 0 : index
    %7 = vector.load %arg3[%c0_5, %c0_6, %c0_7] : memref<4x32x24xf32, #tpu.memory_space<vmem>>, vector<4x32x24xf32>
    "tpu.trace_start"() <{level = 10 : i32, message = "hsk,hkc->hsc"}> : () -> ()
    %cst = arith.constant dense<0.000000e+00> : vector<4x8x24xf32>
    %8 = tpu.matmul %6, %7, %cst {dimension_numbers = #tpu.dot_dimension_numbers<[2], [1], [1], [2], [0, 0, 0, 1, 1, 2], [0], [0]>} : vector<4x8x32xf32>, vector<4x32x24xf32>, vector<4x8x24xf32> -> vector<4x8x24xf32>
    "tpu.trace_stop"() : () -> ()
    %c0_8 = arith.constant 0 : index
    %c0_9 = arith.constant 0 : index
    %c0_10 = arith.constant 0 : index
    %9 = vector.load %arg4[%c0_8, %c0_9, %c0_10] : memref<4x1x24xf32, #tpu.memory_space<vmem>>, vector<4x1x24xf32>
    %10 = vector.broadcast %9 : vector<4x1x24xf32> to vector<4x8x24xf32>
    %11 = arith.addf %8, %10 : vector<4x8x24xf32>
    %12 = vector.extract_strided_slice %11 {offsets = [0, 0, 0], sizes = [4, 8, 8], strides = [1, 1, 1]} : vector<4x8x24xf32> to vector<4x8x8xf32>
    %13 = vector.extract_strided_slice %11 {offsets = [0, 0, 8], sizes = [4, 8, 8], strides = [1, 1, 1]} : vector<4x8x24xf32> to vector<4x8x8xf32>
    %14 = vector.extract_strided_slice %11 {offsets = [0, 0, 16], sizes = [4, 8, 8], strides = [1, 1, 1]} : vector<4x8x24xf32> to vector<4x8x8xf32>
    "tpu.trace_start"() <{level = 10 : i32, message = "hqd,hkd->hqk"}> : () -> ()
    %cst_11 = arith.constant dense<0.000000e+00> : vector<4x8x8xf32>
    %15 = tpu.matmul %12, %13, %cst_11 {dimension_numbers = #tpu.dot_dimension_numbers<[2], [2], [1], [1], [0, 0, 0, 1, 1, 1], [0], [0]>} : vector<4x8x8xf32>, vector<4x8x8xf32>, vector<4x8x8xf32> -> vector<4x8x8xf32>
    "tpu.trace_stop"() : () -> ()
    %cst_12 = arith.constant 0.353553385 : f32
    %16 = vector.broadcast %cst_12 : f32 to vector<4x8x8xf32>
    %17 = arith.mulf %15, %16 : vector<4x8x8xf32>
    %18 = vector.shape_cast %3 : vector<1x8xf32> to vector<1x1x8xf32>
    %19 = vector.broadcast %18 : vector<1x1x8xf32> to vector<4x8x8xf32>
    %20 = arith.addf %17, %19 : vector<4x8x8xf32>
    %cst_13 = arith.constant dense<0xFF800000> : vector<4x8xf32>
    %21 = vector.multi_reduction <maximumf>, %20, %cst_13 [2] : vector<4x8x8xf32> to vector<4x8xf32>
    %22 = vector.shape_cast %21 : vector<4x8xf32> to vector<4x8x1xf32>
    %23 = vector.broadcast %22 : vector<4x8x1xf32> to vector<4x8x8xf32>
    %24 = arith.subf %20, %23 : vector<4x8x8xf32>
    %25 = math.exp %24 : vector<4x8x8xf32>
    %cst_14 = arith.constant dense<0.000000e+00> : vector<4x8xf32>
    %26 = vector.multi_reduction <add>, %25, %cst_14 [2] : vector<4x8x8xf32> to vector<4x8xf32>
    %27 = vector.shape_cast %26 : vector<4x8xf32> to vector<4x8x1xf32>
    %28 = tpu.reciprocal %27 {approx = true} : vector<4x8x1xf32> -> vector<4x8x1xf32>
    %29 = vector.broadcast %28 : vector<4x8x1xf32> to vector<4x8x8xf32>
    %30 = arith.mulf %25, %29 : vector<4x8x8xf32>
    "tpu.trace_start"() <{level = 10 : i32, message = "hqk,hkd->hqd"}> : () -> ()
    %cst_15 = arith.constant dense<0.000000e+00> : vector<4x8x8xf32>
    %31 = tpu.matmul %30, %14, %cst_15 {dimension_numbers = #tpu.dot_dimension_numbers<[2], [1], [1], [2], [0, 0, 0, 1, 1, 2], [0], [0]>} : vector<4x8x8xf32>, vector<4x8x8xf32>, vector<4x8x8xf32> -> vector<4x8x8xf32>
    "tpu.trace_stop"() : () -> ()
    %c0_16 = arith.constant 0 : index
    %c0_17 = arith.constant 0 : index
    %c0_18 = arith.constant 0 : index
    %32 = vector.load %arg5[%c0_16, %c0_17, %c0_18] : memref<4x8x32xf32, #tpu.memory_space<vmem>>, vector<4x8x32xf32>
    "tpu.trace_start"() <{level = 10 : i32, message = "hsd,hdj->hsj"}> : () -> ()
    %cst_19 = arith.constant dense<0.000000e+00> : vector<4x8x32xf32>
    %33 = tpu.matmul %31, %32, %cst_19 {dimension_numbers = #tpu.dot_dimension_numbers<[2], [1], [1], [2], [0, 0, 0, 1, 1, 2], [0], [0]>} : vector<4x8x8xf32>, vector<4x8x32xf32>, vector<4x8x32xf32> -> vector<4x8x32xf32>
    "tpu.trace_stop"() : () -> ()
    %cst_20 = arith.constant dense<0.000000e+00> : vector<8x32xf32>
    %34 = vector.multi_reduction <add>, %33, %cst_20 [0] : vector<4x8x32xf32> to vector<8x32xf32>
    %c0_21 = arith.constant 0 : index
    %c0_22 = arith.constant 0 : index
    %35 = vector.load %arg6[%c0_21, %c0_22] : memref<1x32xf32, #tpu.memory_space<vmem>>, vector<1x32xf32>
    %36 = vector.broadcast %35 : vector<1x32xf32> to vector<8x32xf32>
    %37 = arith.addf %34, %36 : vector<8x32xf32>
    %38 = arith.addf %37, %1 : vector<8x32xf32>
    %c0_23 = arith.constant 0 : index
    %c0_24 = arith.constant 0 : index
    %39 = vector.load %arg7[%c0_23, %c0_24] : memref<1x32xf32, #tpu.memory_space<vmem>>, vector<1x32xf32>
    %c0_25 = arith.constant 0 : index
    %c0_26 = arith.constant 0 : index
    %40 = vector.load %arg8[%c0_25, %c0_26] : memref<1x32xf32, #tpu.memory_space<vmem>>, vector<1x32xf32>
    %cst_27 = arith.constant dense<0.000000e+00> : vector<8xf32>
    %41 = vector.multi_reduction <add>, %38, %cst_27 [1] : vector<8x32xf32> to vector<8xf32>
    %42 = vector.shape_cast %41 : vector<8xf32> to vector<8x1xf32>
    %cst_28 = arith.constant 3.200000e+01 : f32
    %43 = vector.broadcast %cst_28 : f32 to vector<8x1xf32>
    %44 = arith.divf %42, %43 : vector<8x1xf32>
    %45 = vector.broadcast %44 : vector<8x1xf32> to vector<8x32xf32>
    %46 = arith.subf %38, %45 : vector<8x32xf32>
    %47 = arith.mulf %46, %46 : vector<8x32xf32>
    %cst_29 = arith.constant dense<0.000000e+00> : vector<8xf32>
    %48 = vector.multi_reduction <add>, %47, %cst_29 [1] : vector<8x32xf32> to vector<8xf32>
    %49 = vector.shape_cast %48 : vector<8xf32> to vector<8x1xf32>
    %cst_30 = arith.constant 3.200000e+01 : f32
    %50 = vector.broadcast %cst_30 : f32 to vector<8x1xf32>
    %51 = arith.divf %49, %50 : vector<8x1xf32>
    %cst_31 = arith.constant 9.99999996E-13 : f32
    %52 = vector.broadcast %cst_31 : f32 to vector<8x1xf32>
    %53 = arith.addf %51, %52 : vector<8x1xf32>
    %54 = math.rsqrt %53 : vector<8x1xf32>
    %55 = vector.broadcast %54 : vector<8x1xf32> to vector<8x32xf32>
    %56 = arith.mulf %46, %55 : vector<8x32xf32>
    %57 = vector.broadcast %39 : vector<1x32xf32> to vector<8x32xf32>
    %58 = arith.mulf %57, %56 : vector<8x32xf32>
    %59 = vector.broadcast %40 : vector<1x32xf32> to vector<8x32xf32>
    %60 = arith.addf %58, %59 : vector<8x32xf32>
    %c0_32 = arith.constant 0 : index
    %c0_33 = arith.constant 0 : index
    %61 = vector.load %arg9[%c0_32, %c0_33] : memref<32x64xf32, #tpu.memory_space<vmem>>, vector<32x64xf32>
    %cst_34 = arith.constant dense<0.000000e+00> : vector<8x64xf32>
    %62 = tpu.matmul %60, %61, %cst_34 {dimension_numbers = #tpu.dot_dimension_numbers<[1], [0], [0], [1], [0, 0, 1, 1], [], []>} : vector<8x32xf32>, vector<32x64xf32>, vector<8x64xf32> -> vector<8x64xf32>
    %c0_35 = arith.constant 0 : index
    %c0_36 = arith.constant 0 : index
    %63 = vector.load %arg10[%c0_35, %c0_36] : memref<1x64xf32, #tpu.memory_space<vmem>>, vector<1x64xf32>
    %64 = vector.broadcast %63 : vector<1x64xf32> to vector<8x64xf32>
    %65 = arith.addf %62, %64 : vector<8x64xf32>
    %cst_37 = arith.constant 5.000000e-01 : f32
    %66 = vector.broadcast %cst_37 : f32 to vector<8x64xf32>
    %67 = arith.mulf %65, %66 : vector<8x64xf32>
    %cst_38 = arith.constant 0.707106769 : f32
    %68 = vector.broadcast %cst_38 : f32 to vector<8x64xf32>
    %69 = arith.mulf %65, %68 : vector<8x64xf32>
    %70 = math.absf %69 : vector<8x64xf32>
    %cst_39 = arith.constant 0.327591091 : f32
    %71 = vector.broadcast %cst_39 : f32 to vector<8x64xf32>
    %72 = arith.mulf %71, %70 : vector<8x64xf32>
    %cst_40 = arith.constant 1.000000e+00 : f32
    %73 = vector.broadcast %cst_40 : f32 to vector<8x64xf32>
    %74 = arith.addf %73, %72 : vector<8x64xf32>
    %cst_41 = arith.constant 1.000000e+00 : f32
    %75 = vector.broadcast %cst_41 : f32 to vector<8x64xf32>
    %76 = arith.divf %75, %74 : vector<8x64xf32>
    %cst_42 = arith.constant 1.06140542 : f32
    %77 = vector.broadcast %cst_42 : f32 to vector<8x64xf32>
    %78 = arith.mulf %77, %76 : vector<8x64xf32>
    %cst_43 = arith.constant -1.45315206 : f32
    %79 = vector.broadcast %cst_43 : f32 to vector<8x64xf32>
    %80 = arith.addf %78, %79 : vector<8x64xf32>
    %81 = arith.mulf %80, %76 : vector<8x64xf32>
    %cst_44 = arith.constant 1.42141378 : f32
    %82 = vector.broadcast %cst_44 : f32 to vector<8x64xf32>
    %83 = arith.addf %81, %82 : vector<8x64xf32>
    %84 = arith.mulf %83, %76 : vector<8x64xf32>
    %cst_45 = arith.constant -0.284496725 : f32
    %85 = vector.broadcast %cst_45 : f32 to vector<8x64xf32>
    %86 = arith.addf %84, %85 : vector<8x64xf32>
    %87 = arith.mulf %86, %76 : vector<8x64xf32>
    %cst_46 = arith.constant 0.254829586 : f32
    %88 = vector.broadcast %cst_46 : f32 to vector<8x64xf32>
    %89 = arith.addf %87, %88 : vector<8x64xf32>
    %90 = arith.mulf %89, %76 : vector<8x64xf32>
    %cst_47 = arith.constant 0.000000e+00 : f32
    %91 = vector.broadcast %cst_47 : f32 to vector<8x64xf32>
    %92 = arith.subf %91, %70 : vector<8x64xf32>
    %93 = arith.mulf %92, %70 : vector<8x64xf32>
    %94 = math.exp %93 : vector<8x64xf32>
    %95 = arith.mulf %90, %94 : vector<8x64xf32>
    %cst_48 = arith.constant 1.000000e+00 : f32
    %96 = vector.broadcast %cst_48 : f32 to vector<8x64xf32>
    %97 = arith.subf %96, %95 : vector<8x64xf32>
    %cst_49 = arith.constant 0.000000e+00 : f32
    %98 = vector.broadcast %cst_49 : f32 to vector<8x64xf32>
    %99 = arith.cmpf oge, %69, %98 : vector<8x64xf32>
    %cst_50 = arith.constant 0.000000e+00 : f32
    %100 = vector.broadcast %cst_50 : f32 to vector<8x64xf32>
    %101 = arith.subf %100, %97 : vector<8x64xf32>
    %102 = arith.select %99, %97, %101 : vector<8x64xi1>, vector<8x64xf32>
    %cst_51 = arith.constant 1.000000e+00 : f32
    %103 = vector.broadcast %cst_51 : f32 to vector<8x64xf32>
    %104 = arith.addf %103, %102 : vector<8x64xf32>
    %105 = arith.mulf %67, %104 : vector<8x64xf32>
    %c0_52 = arith.constant 0 : index
    %c0_53 = arith.constant 0 : index
    %106 = vector.load %arg11[%c0_52, %c0_53] : memref<64x32xf32, #tpu.memory_space<vmem>>, vector<64x32xf32>
    %cst_54 = arith.constant dense<0.000000e+00> : vector<8x32xf32>
    %107 = tpu.matmul %105, %106, %cst_54 {dimension_numbers = #tpu.dot_dimension_numbers<[1], [0], [0], [1], [0, 0, 1, 1], [], []>} : vector<8x64xf32>, vector<64x32xf32>, vector<8x32xf32> -> vector<8x32xf32>
    %c0_55 = arith.constant 0 : index
    %c0_56 = arith.constant 0 : index
    %108 = vector.load %arg12[%c0_55, %c0_56] : memref<1x32xf32, #tpu.memory_space<vmem>>, vector<1x32xf32>
    %109 = vector.broadcast %108 : vector<1x32xf32> to vector<8x32xf32>
    %110 = arith.addf %107, %109 : vector<8x32xf32>
    %111 = arith.addf %110, %60 : vector<8x32xf32>
    %c0_57 = arith.constant 0 : index
    %c0_58 = arith.constant 0 : index
    %112 = vector.load %arg13[%c0_57, %c0_58] : memref<1x32xf32, #tpu.memory_space<vmem>>, vector<1x32xf32>
    %c0_59 = arith.constant 0 : index
    %c0_60 = arith.constant 0 : index
    %113 = vector.load %arg14[%c0_59, %c0_60] : memref<1x32xf32, #tpu.memory_space<vmem>>, vector<1x32xf32>
    %cst_61 = arith.constant dense<0.000000e+00> : vector<8xf32>
    %114 = vector.multi_reduction <add>, %111, %cst_61 [1] : vector<8x32xf32> to vector<8xf32>
    %115 = vector.shape_cast %114 : vector<8xf32> to vector<8x1xf32>
    %cst_62 = arith.constant 3.200000e+01 : f32
    %116 = vector.broadcast %cst_62 : f32 to vector<8x1xf32>
    %117 = arith.divf %115, %116 : vector<8x1xf32>
    %118 = vector.broadcast %117 : vector<8x1xf32> to vector<8x32xf32>
    %119 = arith.subf %111, %118 : vector<8x32xf32>
    %120 = arith.mulf %119, %119 : vector<8x32xf32>
    %cst_63 = arith.constant dense<0.000000e+00> : vector<8xf32>
    %121 = vector.multi_reduction <add>, %120, %cst_63 [1] : vector<8x32xf32> to vector<8xf32>
    %122 = vector.shape_cast %121 : vector<8xf32> to vector<8x1xf32>
    %cst_64 = arith.constant 3.200000e+01 : f32
    %123 = vector.broadcast %cst_64 : f32 to vector<8x1xf32>
    %124 = arith.divf %122, %123 : vector<8x1xf32>
    %cst_65 = arith.constant 9.99999996E-13 : f32
    %125 = vector.broadcast %cst_65 : f32 to vector<8x1xf32>
    %126 = arith.addf %124, %125 : vector<8x1xf32>
    %127 = math.rsqrt %126 : vector<8x1xf32>
    %128 = vector.broadcast %127 : vector<8x1xf32> to vector<8x32xf32>
    %129 = arith.mulf %119, %128 : vector<8x32xf32>
    %130 = vector.broadcast %112 : vector<1x32xf32> to vector<8x32xf32>
    %131 = arith.mulf %130, %129 : vector<8x32xf32>
    %132 = vector.broadcast %113 : vector<1x32xf32> to vector<8x32xf32>
    %133 = arith.addf %131, %132 : vector<8x32xf32>
    %c0_66 = arith.constant 0 : index
    %c0_67 = arith.constant 0 : index
    %c0_68 = arith.constant 0 : index
    %134 = vector.load %arg15[%c0_66, %c0_67, %c0_68] : memref<1x8x32xf32, #tpu.memory_space<vmem>>, vector<1x8x32xf32>
    %135 = vector.shape_cast %134 : vector<1x8x32xf32> to vector<8x32xf32>
    %136 = vector.shape_cast %133 : vector<8x32xf32> to vector<1x8x32xf32>
    tpu.vector_store %arg15[%c0_66, %c0_67, %c0_68], %136 {strides = array<i32>} : memref<1x8x32xf32, #tpu.memory_space<vmem>>, vector<1x8x32xf32>,
    return
  }
  func.func @transform_0(%arg0: i32) -> (i32, i32, i32) {
    %c0_i32 = arith.constant 0 : i32
    %c0_i32_0 = arith.constant 0 : i32
    %c0_i32_1 = arith.constant 0 : i32
    return %arg0, %c0_i32, %c0_i32_0 : i32, i32, i32
  }
  func.func @transform_1(%arg0: i32) -> (i32, i32, i32) {
    %c0_i32 = arith.constant 0 : i32
    %c0_i32_0 = arith.constant 0 : i32
    %c0_i32_1 = arith.constant 0 : i32
    return %arg0, %c0_i32, %c0_i32_0 : i32, i32, i32
  }
  func.func @transform_2(%arg0: i32) -> (i32, i32, i32) {
    %c0_i32 = arith.constant 0 : i32
    %c0_i32_0 = arith.constant 0 : i32
    %c0_i32_1 = arith.constant 0 : i32
    %c0_i32_2 = arith.constant 0 : i32
    return %c0_i32, %c0_i32_0, %c0_i32_1 : i32, i32, i32
  }
  func.func @transform_3(%arg0: i32) -> (i32, i32, i32) {
    %c0_i32 = arith.constant 0 : i32
    %c0_i32_0 = arith.constant 0 : i32
    %c0_i32_1 = arith.constant 0 : i32
    %c0_i32_2 = arith.constant 0 : i32
    return %c0_i32, %c0_i32_0, %c0_i32_1 : i32, i32, i32
  }
  func.func @transform_4(%arg0: i32) -> (i32, i32, i32) {
    %c0_i32 = arith.constant 0 : i32
    %c0_i32_0 = arith.constant 0 : i32
    %c0_i32_1 = arith.constant 0 : i32
    %c0_i32_2 = arith.constant 0 : i32
    return %c0_i32, %c0_i32_0, %c0_i32_1 : i32, i32, i32
  }
  func.func @transform_5(%arg0: i32) -> (i32, i32) {
    %c0_i32 = arith.constant 0 : i32
    %c0_i32_0 = arith.constant 0 : i32
    %c0_i32_1 = arith.constant 0 : i32
    return %c0_i32, %c0_i32_0 : i32, i32
  }
  func.func @transform_6(%arg0: i32) -> (i32, i32) {
    %c0_i32 = arith.constant 0 : i32
    %c0_i32_0 = arith.constant 0 : i32
    %c0_i32_1 = arith.constant 0 : i32
    return %c0_i32, %c0_i32_0 : i32, i32
  }
  func.func @transform_7(%arg0: i32) -> (i32, i32) {
    %c0_i32 = arith.constant 0 : i32
    %c0_i32_0 = arith.constant 0 : i32
    %c0_i32_1 = arith.constant 0 : i32
    return %c0_i32, %c0_i32_0 : i32, i32
  }
  func.func @transform_8(%arg0: i32) -> (i32, i32) {
    %c0_i32 = arith.constant 0 : i32
    %c0_i32_0 = arith.constant 0 : i32
    %c0_i32_1 = arith.constant 0 : i32
    return %c0_i32, %c0_i32_0 : i32, i32
  }
  func.func @transform_9(%arg0: i32) -> (i32, i32) {
    %c0_i32 = arith.constant 0 : i32
    %c0_i32_0 = arith.constant 0 : i32
    %c0_i32_1 = arith.constant 0 : i32
    return %c0_i32, %c0_i32_0 : i32, i32
  }
  func.func @transform_10(%arg0: i32) -> (i32, i32) {
    %c0_i32 = arith.constant 0 : i32
    %c0_i32_0 = arith.constant 0 : i32
    %c0_i32_1 = arith.constant 0 : i32
    return %c0_i32, %c0_i32_0 : i32, i32
  }
  func.func @transform_11(%arg0: i32) -> (i32, i32) {
    %c0_i32 = arith.constant 0 : i32
    %c0_i32_0 = arith.constant 0 : i32
    %c0_i32_1 = arith.constant 0 : i32
    return %c0_i32, %c0_i32_0 : i32, i32
  }
  func.func @transform_12(%arg0: i32) -> (i32, i32) {
    %c0_i32 = arith.constant 0 : i32
    %c0_i32_0 = arith.constant 0 : i32
    %c0_i32_1 = arith.constant 0 : i32
    return %c0_i32, %c0_i32_0 : i32, i32
  }
  func.func @transform_13(%arg0: i32) -> (i32, i32) {
    %c0_i32 = arith.constant 0 : i32
    %c0_i32_0 = arith.constant 0 : i32
    %c0_i32_1 = arith.constant 0 : i32
    return %c0_i32, %c0_i32_0 : i32, i32
  }
  func.func @transform_14(%arg0: i32) -> (i32, i32, i32) {
    %c0_i32 = arith.constant 0 : i32
    %c0_i32_0 = arith.constant 0 : i32
    %c0_i32_1 = arith.constant 0 : i32
    return %arg0, %c0_i32, %c0_i32_0 : i32, i32, i32
  }
}

</mosaic_0001>

<bundles_post_ra>
// kernel: tpu_custom_call.1
= control target key start
LH: loop header
LB: loop body
LE: loop exit
PB: predicated region body
PF: predicated region fallthrough
CT: control target
= control target key end

     0   :  { %s4205_s0 = inlined_call_operand.hbm [shape: f32[2,8,32], index: 0, kind: input, shape index: {}]   ;;  %s4206_s1 = inlined_call_operand.hbm [shape: f32[2,1,8], index: 1, kind: input, shape index: {}]   ;;  %s4207_s2 = inlined_call_operand.hbm [shape: f32[4,32,24], index: 2, kind: input, shape index: {}]   ;;  %s4208_s3 = inlined_call_operand.hbm [shape: f32[4,1,24], index: 3, kind: input, shape index: {}]   ;;  %s4209_s4 = inlined_call_operand.hbm [shape: f32[4,8,32], index: 4, kind: input, shape index: {}]   ;;  %s4210_s5 = inlined_call_operand.hbm [shape: f32[1,32], index: 5, kind: input, shape index: {}]   ;;  %s4211_s6 = inlined_call_operand.hbm [shape: f32[1,32], index: 6, kind: input, shape index: {}]   ;;  %s4212_s7 = inlined_call_operand.hbm [shape: f32[1,32], index: 7, kind: input, shape index: {}]   ;;  %s4213_s8 = inlined_call_operand.hbm [shape: f32[32,64], index: 8, kind: input, shape index: {}]   ;;  %s4214_s9 = inlined_call_operand.hbm [shape: f32[1,64], index: 9, kind: input, shape index: {}]   ;;  %s4215_s10 = inlined_call_operand.hbm [shape: f32[64,32], index: 10, kind: input, shape index: {}]   ;;  %s4216_s11 = inlined_call_operand.hbm [shape: f32[1,32], index: 11, kind: input, shape index: {}]   ;;  %s4217_s12 = inlined_call_operand.hbm [shape: f32[1,32], index: 12, kind: input, shape index: {}]   ;;  %s4218_s13 = inlined_call_operand.hbm [shape: f32[1,32], index: 13, kind: input, shape index: {}]   ;;  %s4219_s14 = inlined_call_operand.hbm [shape: f32[2,8,32], index: 14, kind: output, shape index: {}]  }
   0x1   :  { %4233 = sst [smem:[#allocation39_spill]] %s4205_s0 }
   0x2   :  { %4234 = sst [smem:[#allocation40_spill]] %s4206_s1 }
   0x3   :  { %4235 = sst [smem:[#allocation41_spill]] %s4207_s2 }
   0x4   :  { %4236 = sst [smem:[#allocation42_spill]] %s4208_s3 }
   0x5   :  { %4237 = sst [smem:[#allocation43_spill]] %s4209_s4 }
   0x6   :  { %4238 = sst [smem:[#allocation44_spill]] %s4210_s5 }
   0x7   :  { %4239 = sst [smem:[#allocation45_spill]] %s4211_s6 }
   0x8   :  { %4240 = sst [smem:[#allocation46_spill]] %s4219_s14 }
   0x9   :  { %19 = vsyncpa [#allocation3], 0 }
   0xa   :  { %21 = vsyncpa [#allocation3 + $0x1], 0 }
   0xb   :  { %22 = vsyncpa [#allocation6], 0 }
   0xc   :  { %24 = vsyncpa [#allocation6 + $0x1], 0 }
   0xd   :  { %25 = vsyncpa [#allocation9], 0 }
   0xe   :  { %26 = vsyncpa [#allocation12], 0 }
   0xf   :  { %27 = vsyncpa [#allocation15], 0 }
  0x10   :  { %28 = vsyncpa [#allocation18], 0 }
  0x11   :  { %29 = vsyncpa [#allocation21], 0 }
  0x12   :  { %30 = vsyncpa [#allocation24], 0 }
  0x13   :  { %31 = vsyncpa [#allocation4], 0 }
  0x14   :  { %33 = vsyncpa [#allocation4 + $0x1], 0  ;;  %s3574_s29 = smov 0   ;;  %s3576_s30 = smov 0  }
  0x15   :  { %s3578_s15 = smov 0   ;;  %s3580_s16 = smov 0  }
  0x16 LB: > { %4241 = sst [smem:[#allocation36_spill]] %s3461_s29  ;;  %s3475_s17 = smov [#allocation7]   ;;  %s3473_s16 = sphi %s3580_s16, %s4290_s16   ;;  %s3469_s15 = sphi %s3578_s15, %s4289_s15   ;;  %s3465_s30 = sphi %s3576_s30, %s4288_s30   ;;  %s3461_s29 = sphi %s3574_s29, %s4287_s29  }
  0x17   : > { %s386_s18 = sshll.u32 %s3475_s17, 4  ;;  %s3595_s19 = sadd.s32 4294967295, %s3473_s16   ;;  %s3600_s18 = int_to_ptr.vmem [resolvable:$true] %s386_s18 }
  0x18   : > { %4242 = sst [smem:[#allocation37_spill]] %s3595_s19  ;;  %p2470_p0 = scmp.ge.s32.totalorder %s3473_s16, 1 }
  0x19   : > { %p4229_p1 = scmp.eq.s32.totalorder %s3595_s19, 0  ;;  %p374_p2 = scmp.lt.s32.totalorder %s3473_s16, 3 }
  0x1a   : > { %s3476_s21 = smov [#allocation8]   ;;  %s3477_s24 = smov [#allocation11]  }
  0x1b   : > { %p3602_p3 = pnand %p2470_p0, %p374_p2  ;;  %s399_s22 = sshll.u32 %s3476_s21, 4  ;;  %s3615_s22 = int_to_ptr.vmem [resolvable:$true] %s399_s22 }
  0x1c   : > { %s3617_s25 = sshll.u32 %s3477_s24, 4  ;;  %s4246_s2 = sld [smem:[#allocation41_spill]]  ;;  %s427_s25 = int_to_ptr.vmem [resolvable:$true] %s3617_s25 }
  0x1d   : > { %s4243_s20 = scalar_select %p3602_p3, 1, 0 }
  0x1e   : > { %p2828_p5 = pneg %p3602_p3 }
  0x1f   : > { %4244 = sst [smem:[#allocation38_spill]] %s4243_s20 }
  0x20   : > { %p3611_p6 = pnand %p2828_p5, %p4229_p1 }
  0x22   : > { %s2979_s28 = scalar_lea.hbm %s4246_s2, 2048  ;;  %p3627_p8 = pneg %p3611_p6 }
  0x23   : > { %p2980_p7 = scmp.ne.s32.totalorder %s4246_s2, %s2979_s28  ;;  %p2986_p11 = scmp.lt.u32.totalorder %s2979_s28, %s4246_s2 }
  0x25   : > { %p2982_p9 = pnand %p3627_p8, %p2980_p7 }
  0x27   : > { %p2983_p10 = pneg %p2982_p9 }
  0x29   : > { %p2988_p12 = pnand %p2986_p11, %p2983_p10 }
  0x2b   : > { %2991 = shalt.err (!%p2988_p12)
}
  0x2c   : > { %s2992_s14 = scalar_lea.vmem %s3600_s18, 2048  ;;  %p3000_p5 = scmp.lt.s32.totalorder %s3600_s18, %s3600_s18 }
  0x2d   : > { %p2993_p13 = scmp.ne.s32.totalorder %s3600_s18, %s2992_s14  ;;  %p3001_p4 = scmp.lt.s32.totalorder %s2992_s14, %s2992_s14 }
  0x2f   : > { %p2995_p0 = pnand %p2993_p13, %p3627_p8  ;;  %p3002_p7 = por %p3001_p4, %p3000_p5 }
  0x31   : > { %p2996_p2 = pneg %p2995_p0 }
  0x33   : > { %p3003_p9 = pnand %p3002_p7, %p2996_p2 }
  0x35   : > { %3006 = shalt.err (!%p3003_p9)
}
  0x36   : > { %s4227_s26 = smov 128   ;;  %s3479_s20 = smov 8  }
  0x37   : > { %2831 = dma.hbm_to_vmem [thread:$0]  (!%p3611_p6), %s4246_s2, 2048, %s3600_s18, [#allocation6], %s4227_s26, %s4227_s26, %s3479_s20  }
  0x38   : > { %s4248_s3 = sld [smem:[#allocation42_spill]] }
  0x3e   : > { %s3007_s14 = scalar_lea.hbm %s4248_s3, 64 }
  0x3f   : > { %p3008_p4 = scmp.ne.s32.totalorder %s4248_s3, %s3007_s14  ;;  %p3014_p12 = scmp.lt.u32.totalorder %s3007_s14, %s4248_s3 }
  0x41   : > { %p3010_p10 = pnand %p3008_p4, %p3627_p8 }
  0x43   : > { %p3011_p11 = pneg %p3010_p10 }
  0x45   : > { %p3016_p13 = pnand %p3014_p12, %p3011_p11 }
  0x47   : > { %3019 = shalt.err (!%p3016_p13)
}
  0x48   : > { %s3020_s18 = scalar_lea.vmem %s3615_s22, 64  ;;  %p3028_p7 = scmp.lt.s32.totalorder %s3615_s22, %s3615_s22 }
  0x49   : > { %p3021_p0 = scmp.ne.s32.totalorder %s3615_s22, %s3020_s18  ;;  %p3029_p9 = scmp.lt.s32.totalorder %s3020_s18, %s3020_s18 }
  0x4b   : > { %p3023_p2 = pnand %p3021_p0, %p3627_p8  ;;  %p3030_p4 = por %p3029_p9, %p3028_p7 }
  0x4d   : > { %p3024_p5 = pneg %p3023_p2 }
  0x4f   : > { %p3031_p10 = pnand %p3030_p4, %p3024_p5 }
  0x51   : > { %3034 = shalt.err (!%p3031_p10)
}
  0x52   : > { %s3480_s0 = smov 16   ;;  %s3481_s1 = smov 1  }
  0x53   : > { %2834 = dma.hbm_to_vmem [thread:$0]  (!%p3611_p6), %s4248_s3, 64, %s3615_s22, [#allocation9], %s3480_s0, %s3480_s0, %s3481_s1  }
  0x54   : > { %s4249_s5 = sld [smem:[#allocation44_spill]] }
  0x5a   : > { %s3035_s17 = scalar_lea.hbm %s4249_s5, 16 }
  0x5b   : > { %p3036_p11 = scmp.ne.s32.totalorder %s4249_s5, %s3035_s17  ;;  %p3042_p0 = scmp.lt.u32.totalorder %s3035_s17, %s4249_s5 }
  0x5d   : > { %p3038_p12 = pnand %p3036_p11, %p3627_p8 }
  0x5f   : > { %p3039_p13 = pneg %p3038_p12 }
  0x61   : > { %p3044_p2 = pnand %p3042_p0, %p3039_p13 }
  0x63   : > { %3047 = shalt.err (!%p3044_p2)
}
  0x64   : > { %s3048_s29 = scalar_lea.vmem %s427_s25, 16  ;;  %s3055_s22 = scalar_lea.vmem %s427_s25, 32 }
  0x65   : > { %p3049_p5 = scmp.ne.s32.totalorder %s427_s25, %s3048_s29  ;;  %p3056_p4 = scmp.lt.s32.totalorder %s427_s25, %s427_s25 }
  0x66   : > { %p3057_p10 = scmp.lt.s32.totalorder %s3055_s22, %s3048_s29 }
  0x67   : > { %p3051_p7 = pnand %p3049_p5, %p3627_p8 }
  0x68   : > { %p3058_p1 = por %p3057_p10, %p3056_p4 }
  0x69   : > { %p3052_p9 = pneg %p3051_p7 }
  0x6b   : > { %p3059_p3 = pnand %p3058_p1, %p3052_p9 }
  0x6d   : > { %3062 = shalt.err (!%p3059_p3)
}
  0x6e   : > { %2840 = dma.hbm_to_vmem [thread:$0]  (!%p3611_p6), %s4249_s5, 16, %s427_s25, [#allocation12]  }
  0x6f   : > { %s3482_s26 = smov [#allocation14]   ;;  %s3483_s27 = smov [#allocation17]  }
  0x70   : > { %s448_s19 = sshll.u32 %s3482_s26, 4  ;;  %s472_s28 = sshll.u32 %s3483_s27, 4  ;;  %s449_s19 = int_to_ptr.vmem [resolvable:$true] %s448_s19  ;;  %s473_s28 = int_to_ptr.vmem [resolvable:$true] %s472_s28 }
  0x71   : > { %s3063_s14 = scalar_lea.hbm %s4212_s7, 16 }
  0x72   : > { %p3064_p1 = scmp.ne.s32.totalorder %s4212_s7, %s3063_s14  ;;  %p3070_p12 = scmp.lt.u32.totalorder %s3063_s14, %s4212_s7 }
  0x74   : > { %p3066_p3 = pnand %p3064_p1, %p3627_p8 }
  0x76   : > { %p3067_p11 = pneg %p3066_p3 }
  0x78   : > { %p3072_p13 = pnand %p3070_p12, %p3067_p11 }
  0x7a   : > { %3075 = shalt.err (!%p3072_p13)
}
  0x7b   : > { %s3076_s25 = scalar_lea.vmem %s449_s19, 16  ;;  %s3083_s1 = scalar_lea.vmem %s449_s19, 32 }
  0x7c   : > { %p3077_p0 = scmp.ne.s32.totalorder %s449_s19, %s3076_s25  ;;  %p3084_p7 = scmp.lt.s32.totalorder %s449_s19, %s449_s19 }
  0x7d   : > { %p3085_p9 = scmp.lt.s32.totalorder %s3083_s1, %s3076_s25 }
  0x7e   : > { %p3079_p2 = pnand %p3077_p0, %p3627_p8 }
  0x7f   : > { %p3086_p4 = por %p3085_p9, %p3084_p7 }
  0x80   : > { %p3080_p5 = pneg %p3079_p2 }
  0x82   : > { %p3087_p10 = pnand %p3086_p4, %p3080_p5 }
  0x84   : > { %3090 = shalt.err (!%p3087_p10)
}
  0x85   : > { %2846 = dma.hbm_to_vmem [thread:$0]  (!%p3611_p6), %s4212_s7, 16, %s449_s19, [#allocation15]  }
  0x86   : > { %s3091_s14 = scalar_lea.hbm %s4214_s9, 16 }
  0x87   : > { %p3092_p1 = scmp.ne.s32.totalorder %s4214_s9, %s3091_s14  ;;  %p3098_p12 = scmp.lt.u32.totalorder %s3091_s14, %s4214_s9 }
  0x89   : > { %p3094_p3 = pnand %p3092_p1, %p3627_p8 }
  0x8b   : > { %p3095_p11 = pneg %p3094_p3 }
  0x8d   : > { %p3100_p13 = pnand %p3098_p12, %p3095_p11 }
  0x8f   : > { %3103 = shalt.err (!%p3100_p13)
}
  0x90   : > { %s3104_s25 = scalar_lea.vmem %s473_s28, 16  ;;  %s3111_s19 = scalar_lea.vmem %s473_s28, 32 }
  0x91   : > { %p3105_p0 = scmp.ne.s32.totalorder %s473_s28, %s3104_s25  ;;  %p3112_p7 = scmp.lt.s32.totalorder %s473_s28, %s473_s28 }
  0x92   : > { %p3113_p9 = scmp.lt.s32.totalorder %s3111_s19, %s3104_s25 }
  0x93   : > { %p3107_p2 = pnand %p3105_p0, %p3627_p8 }
  0x94   : > { %p3114_p4 = por %p3113_p9, %p3112_p7 }
  0x95   : > { %p3108_p5 = pneg %p3107_p2 }
  0x97   : > { %p3115_p10 = pnand %p3114_p4, %p3108_p5 }
  0x99   : > { %3118 = shalt.err (!%p3115_p10)
}
  0x9a   : > { %2852 = dma.hbm_to_vmem [thread:$0]  (!%p3611_p6), %s4214_s9, 16, %s473_s28, [#allocation18]  }
  0x9b   : > { %s3484_s27 = smov [#allocation20]   ;;  %s3485_s24 = smov [#allocation10]  }
  0x9c   : > { %s496_s17 = sshll.u32 %s3484_s27, 4  ;;  %s412_s14 = sshll.u32 %s3485_s24, 4  ;;  %s497_s17 = int_to_ptr.vmem [resolvable:$true] %s496_s17  ;;  %s413_s14 = int_to_ptr.vmem [resolvable:$true] %s412_s14 }
  0x9d   : > { %s3119_s22 = scalar_lea.hbm %s4216_s11, 16 }
  0x9e   : > { %p3120_p1 = scmp.ne.s32.totalorder %s4216_s11, %s3119_s22  ;;  %p3126_p12 = scmp.lt.u32.totalorder %s3119_s22, %s4216_s11 }
  0xa0   : > { %p3122_p3 = pnand %p3120_p1, %p3627_p8 }
  0xa2   : > { %p3123_p11 = pneg %p3122_p3 }
  0xa4   : > { %p3128_p13 = pnand %p3126_p12, %p3123_p11 }
  0xa6   : > { %3131 = shalt.err (!%p3128_p13)
}
  0xa7   : > { %s3132_s28 = scalar_lea.vmem %s497_s17, 16  ;;  %s3139_s26 = scalar_lea.vmem %s497_s17, 32 }
  0xa8   : > { %p3133_p0 = scmp.ne.s32.totalorder %s497_s17, %s3132_s28  ;;  %p3140_p7 = scmp.lt.s32.totalorder %s497_s17, %s497_s17 }
  0xa9   : > { %p3141_p9 = scmp.lt.s32.totalorder %s3139_s26, %s3132_s28 }
  0xaa   : > { %p3135_p2 = pnand %p3133_p0, %p3627_p8 }
  0xab   : > { %p3142_p4 = por %p3141_p9, %p3140_p7 }
  0xac   : > { %p3136_p5 = pneg %p3135_p2 }
  0xae   : > { %p3143_p10 = pnand %p3142_p4, %p3136_p5 }
  0xb0   : > { %3146 = shalt.err (!%p3143_p10)
}
  0xb1   : > { %2858 = dma.hbm_to_vmem [thread:$0]  (!%p3611_p6), %s4216_s11, 16, %s497_s17, [#allocation21]  }
  0xb2   : > { %s4250_s4 = sld [smem:[#allocation43_spill]] }
  0xb8   : > { %s3147_s22 = scalar_lea.hbm %s4250_s4, 512 }
  0xb9   : > { %p3148_p1 = scmp.ne.s32.totalorder %s4250_s4, %s3147_s22  ;;  %p3154_p12 = scmp.lt.u32.totalorder %s3147_s22, %s4250_s4 }
  0xbb   : > { %p3150_p3 = pnand %p3148_p1, %p3627_p8 }
  0xbd   : > { %p3151_p11 = pneg %p3150_p3 }
  0xbf   : > { %p3156_p13 = pnand %p3154_p12, %p3151_p11 }
  0xc1   : > { %3159 = shalt.err (!%p3156_p13)
}
  0xc2   : > { %s3160_s28 = scalar_lea.vmem %s413_s14, 512  ;;  %p3168_p7 = scmp.lt.s32.totalorder %s413_s14, %s413_s14 }
  0xc3   : > { %p3161_p0 = scmp.ne.s32.totalorder %s413_s14, %s3160_s28  ;;  %p3169_p9 = scmp.lt.s32.totalorder %s3160_s28, %s3160_s28 }
  0xc5   : > { %p3163_p2 = pnand %p3161_p0, %p3627_p8  ;;  %p3170_p4 = por %p3169_p9, %p3168_p7 }
  0xc7   : > { %p3164_p5 = pneg %p3163_p2 }
  0xc9   : > { %p3171_p10 = pnand %p3170_p4, %p3164_p5 }
  0xcb   : > { %3174 = shalt.err (!%p3171_p10)
}
  0xcc   : > { %s4251_s17 = smov 128   ;;  %s3486_s24 = smov [#allocation13]  }
  0xcd   : > { %2837 = dma.hbm_to_vmem [thread:$0]  (!%p3611_p6), %s4250_s4, 512, %s413_s14, [#allocation9], %s4251_s17, %s4251_s17, %s3479_s20  }
  0xce   : > { %s437_s18 = sshll.u32 %s3486_s24, 4  ;;  %s3487_s29 = smov [#allocation16]   ;;  %s438_s18 = int_to_ptr.vmem [resolvable:$true] %s437_s18 }
  0xcf   : > { %s458_s22 = sshll.u32 %s3487_s29, 4  ;;  %s4252_s6 = sld [smem:[#allocation45_spill]]  ;;  %s459_s22 = int_to_ptr.vmem [resolvable:$true] %s458_s22 }
  0xd5   : > { %s3175_s19 = scalar_lea.hbm %s4252_s6, 16 }
  0xd6   : > { %p3176_p1 = scmp.ne.s32.totalorder %s4252_s6, %s3175_s19  ;;  %p3182_p12 = scmp.lt.u32.totalorder %s3175_s19, %s4252_s6 }
  0xd8   : > { %p3178_p3 = pnand %p3176_p1, %p3627_p8 }
  0xda   : > { %p3179_p11 = pneg %p3178_p3 }
  0xdc   : > { %p3184_p13 = pnand %p3182_p12, %p3179_p11 }
  0xde   : > { %3187 = shalt.err (!%p3184_p13)
}
  0xdf   : > { %s3188_s14 = scalar_lea.vmem %s438_s18, 16  ;;  %s3195_s27 = scalar_lea.vmem %s438_s18, 32 }
  0xe0   : > { %p3189_p0 = scmp.ne.s32.totalorder %s438_s18, %s3188_s14  ;;  %p3196_p7 = scmp.lt.s32.totalorder %s438_s18, %s438_s18 }
  0xe1   : > { %p3197_p9 = scmp.lt.s32.totalorder %s3195_s27, %s3188_s14 }
  0xe2   : > { %p3191_p2 = pnand %p3189_p0, %p3627_p8 }
  0xe3   : > { %p3198_p4 = por %p3197_p9, %p3196_p7 }
  0xe4   : > { %p3192_p5 = pneg %p3191_p2 }
  0xe6   : > { %p3199_p10 = pnand %p3198_p4, %p3192_p5 }
  0xe8   : > { %3202 = shalt.err (!%p3199_p10)
}
  0xe9   : > { %2843 = dma.hbm_to_vmem [thread:$0]  (!%p3611_p6), %s4252_s6, 16, %s438_s18, [#allocation12]  }
  0xea   : > { %s3203_s25 = scalar_lea.hbm %s4213_s8, 512 }
  0xeb   : > { %p3204_p1 = scmp.ne.s32.totalorder %s4213_s8, %s3203_s25  ;;  %p3210_p12 = scmp.lt.u32.totalorder %s3203_s25, %s4213_s8 }
  0xed   : > { %p3206_p3 = pnand %p3204_p1, %p3627_p8 }
  0xef   : > { %p3207_p11 = pneg %p3206_p3 }
  0xf1   : > { %p3212_p13 = pnand %p3210_p12, %p3207_p11 }
  0xf3   : > { %3215 = shalt.err (!%p3212_p13)
}
  0xf4   : > { %s3216_s14 = scalar_lea.vmem %s459_s22, 512  ;;  %p3224_p7 = scmp.lt.s32.totalorder %s459_s22, %s459_s22 }
  0xf5   : > { %p3217_p0 = scmp.ne.s32.totalorder %s459_s22, %s3216_s14  ;;  %p3225_p9 = scmp.lt.s32.totalorder %s3216_s14, %s3216_s14 }
  0xf7   : > { %p3219_p2 = pnand %p3217_p0, %p3627_p8  ;;  %p3226_p4 = por %p3225_p9, %p3224_p7 }
  0xf9   : > { %p3220_p5 = pneg %p3219_p2 }
  0xfb   : > { %p3227_p10 = pnand %p3226_p4, %p3220_p5 }
  0xfd   : > { %3230 = shalt.err (!%p3227_p10)
}
  0xfe   : > { %2849 = dma.hbm_to_vmem [thread:$0]  (!%p3611_p6), %s4213_s8, 512, %s459_s22, [#allocation15], %s4251_s17, %s4251_s17, %s3479_s20  }
  0xff   : > { %s3488_s24 = smov [#allocation19]   ;;  %s3489_s2 = smov [#allocation22]  }
 0x100   : > { %s482_s29 = sshll.u32 %s3488_s24, 4  ;;  %s507_s0 = sshll.u32 %s3489_s2, 4  ;;  %s483_s29 = int_to_ptr.vmem [resolvable:$true] %s482_s29  ;;  %s508_s0 = int_to_ptr.vmem [resolvable:$true] %s507_s0 }
 0x101   : > { %s3231_s1 = scalar_lea.hbm %s4215_s10, 1024 }
 0x102   : > { %p3232_p1 = scmp.ne.s32.totalorder %s4215_s10, %s3231_s1  ;;  %p3238_p12 = scmp.lt.u32.totalorder %s3231_s1, %s4215_s10 }
 0x104   : > { %p3234_p3 = pnand %p3232_p1, %p3627_p8 }
 0x106   : > { %p3235_p11 = pneg %p3234_p3 }
 0x108   : > { %p3240_p13 = pnand %p3238_p12, %p3235_p11 }
 0x10a   : > { %3243 = shalt.err (!%p3240_p13)
}
 0x10b   : > { %s3244_s22 = scalar_lea.vmem %s483_s29, 1024  ;;  %p3252_p7 = scmp.lt.s32.totalorder %s483_s29, %s483_s29 }
 0x10c   : > { %p3245_p0 = scmp.ne.s32.totalorder %s483_s29, %s3244_s22  ;;  %p3253_p9 = scmp.lt.s32.totalorder %s3244_s22, %s3244_s22 }
 0x10e   : > { %p3247_p2 = pnand %p3245_p0, %p3627_p8  ;;  %p3254_p4 = por %p3253_p9, %p3252_p7 }
 0x110   : > { %p3248_p5 = pneg %p3247_p2 }
 0x112   : > { %p3255_p10 = pnand %p3254_p4, %p3248_p5 }
 0x114   : > { %3258 = shalt.err (!%p3255_p10)
}
 0x115   : > { %2855 = dma.hbm_to_vmem [thread:$0]  (!%p3611_p6), %s4215_s10, 1024, %s483_s29, [#allocation18], %s4251_s17, %s4251_s17, %s3479_s20  }
 0x116   : > { %s3259_s19 = scalar_lea.hbm %s4217_s12, 16 }
 0x117   : > { %p3260_p1 = scmp.ne.s32.totalorder %s4217_s12, %s3259_s19  ;;  %p3266_p12 = scmp.lt.u32.totalorder %s3259_s19, %s4217_s12 }
 0x119   : > { %p3262_p3 = pnand %p3260_p1, %p3627_p8 }
 0x11b   : > { %p3263_p11 = pneg %p3262_p3 }
 0x11d   : > { %p3268_p13 = pnand %p3266_p12, %p3263_p11 }
 0x11f   : > { %3271 = shalt.err (!%p3268_p13)
}
 0x120   : > { %s3272_s18 = scalar_lea.vmem %s508_s0, 16  ;;  %s3279_s20 = scalar_lea.vmem %s508_s0, 32 }
 0x121   : > { %p3273_p0 = scmp.ne.s32.totalorder %s508_s0, %s3272_s18  ;;  %p3280_p7 = scmp.lt.s32.totalorder %s508_s0, %s508_s0 }
 0x122   : > { %p3281_p9 = scmp.lt.s32.totalorder %s3279_s20, %s3272_s18 }
 0x123   : > { %p3275_p2 = pnand %p3273_p0, %p3627_p8 }
 0x124   : > { %p3282_p4 = por %p3281_p9, %p3280_p7 }
 0x125   : > { %p3276_p5 = pneg %p3275_p2 }
 0x127   : > { %p3283_p10 = pnand %p3282_p4, %p3276_p5 }
 0x129   : > { %3286 = shalt.err (!%p3283_p10)
}
 0x12a   : > { %2861 = dma.hbm_to_vmem [thread:$0]  (!%p3611_p6), %s4217_s12, 16, %s508_s0, [#allocation21]  }
 0x12b   : > { %s3490_s22 = smov [#allocation23]   ;;  %s3287_s25 = scalar_lea.hbm %s4218_s13, 16 }
 0x12c   : > { %s518_s27 = sshll.u32 %s3490_s22, 4  ;;  %p3288_p1 = scmp.ne.s32.totalorder %s4218_s13, %s3287_s25  ;;  %s519_s27 = int_to_ptr.vmem [resolvable:$true] %s518_s27 }
 0x12d   : > { %p3294_p12 = scmp.lt.u32.totalorder %s3287_s25, %s4218_s13 }
 0x12e   : > { %p3290_p3 = pnand %p3288_p1, %p3627_p8 }
 0x130   : > { %p3291_p11 = pneg %p3290_p3 }
 0x132   : > { %p3296_p13 = pnand %p3294_p12, %p3291_p11 }
 0x134   : > { %3299 = shalt.err (!%p3296_p13)
}
 0x135   : > { %s3300_s0 = scalar_lea.vmem %s519_s27, 16  ;;  %s3307_s14 = scalar_lea.vmem %s519_s27, 32 }
 0x136   : > { %p3301_p0 = scmp.ne.s32.totalorder %s519_s27, %s3300_s0  ;;  %p3308_p7 = scmp.lt.s32.totalorder %s519_s27, %s519_s27 }
 0x137   : > { %p3309_p9 = scmp.lt.s32.totalorder %s3307_s14, %s3300_s0 }
 0x138   : > { %p3303_p2 = pnand %p3301_p0, %p3627_p8 }
 0x139   : > { %p3310_p4 = por %p3309_p9, %p3308_p7 }
 0x13a   : > { %p3304_p5 = pneg %p3303_p2 }
 0x13c   : > { %p3311_p10 = pnand %p3310_p4, %p3304_p5 }
 0x13e   : > { %3314 = shalt.err (!%p3311_p10)
}
 0x13f   : > { %s4253_s21 = sld [smem:[#allocation36_spill]]  ;;  %s4254_s17 = sld [smem:[#allocation37_spill]] }
 0x140   : > { %2864 = dma.hbm_to_vmem [thread:$0]  (!%p3611_p6), %s4218_s13, 16, %s519_s27, [#allocation24]  }
 0x141   : > { %s2469_s29 = sadd.s32 4294967294, %s3473_s16   ;;  %s3866_s23 = sadd.s32 1, %s3473_s16  }
 0x142   : > { %s43_s22 = ssub.s32 %s3473_s16, %s3866_s23  ;;  %s46_s24 = sadd.s32 1, %s3469_s15 }
 0x143   : > { %p44_p8 = scmp.eq.s32.totalorder %s43_s22, 0  ;;  %p53_p1 = scmp.ne.s32.totalorder %s3469_s15, %s3465_s30 }
 0x144   : > { %p54_p3 = scmp.eq.s32.totalorder %s3473_s16, 0  ;;  %p367_p2 = scmp.eq.s32.totalorder %s2469_s29, 1 }
 0x145   : > { %p59_p11 = scmp.ne.s32.totalorder %s3465_s30, %s4253_s21  ;;  %p4256_p13 = scmp.eq.s32.totalorder %s4254_s17, 0 }
 0x146   : > { %s3877_s2 = scalar_select %p44_p8, %s3469_s15, %s46_s24  }
 0x147   : > { %p3879_p12 = por %p54_p3, %p53_p1  ;;  %p3885_p6 = por %p4256_p13, %p59_p11 }
 0x148   : > { %p361_p0 = scmp.eq.s32.totalorder %s4254_s17, 1  ;;  %p2888_p5 = scmp.lt.s32.totalorder %s3473_s16, 2 }
 0x149   : > { %s4257_s27 = scalar_select %p3885_p6, 1, 0 }
 0x14a   : > { %s3892_s19 = sand.u32 1, %s3469_s15   ;;  %p3894_p7 = por %p361_p0, %p53_p1 }
 0x14b   : > { %p3898_p9 = por %p367_p2, %p59_p11  ;;  %s2484_s26 = sshll.u32 %s3892_s19, 3 }
 0x14c   : > { %s4258_s1 = scalar_select %p3894_p7, 1, 0 }
 0x14d   : > { %s4259_s28 = scalar_select %p3898_p9, 1, 0 }
 0x14e   : > { %s2485_s0 = sshll.u32 %s3473_s16, 7  ;;  %s4260_s20 = sld [smem:[#allocation39_spill]] }
 0x14f   : > { %s533_s17 = scalar_lea.vmem [#allocation2], %s2484_s26  ;;  %p3913_p4 = pnand %p2888_p5, %p3879_p12 }
 0x150   : > { %s540_s29 = sshll.u32 %s533_s17, 4  ;;  %s530_s3 = scalar_lea.sflag [#allocation3], %s3892_s19  ;;  %s3909_s29 = int_to_ptr.vmem [resolvable:$true] %s540_s29 }
 0x151   : > { %p3317_p8 = pneg %p3913_p4 }
 0x154   : > { %s3907_s21 = scalar_lea.hbm %s4260_s20, %s2485_s0  ;;  %s3320_s25 = scalar_lea.hbm %s4260_s20, 256 }
 0x155   : > { %s3315_s14 = scalar_lea.hbm %s3907_s21, 128  ;;  %p3321_p11 = scmp.lt.u32.totalorder %s3907_s21, %s4260_s20 }
 0x156   : > { %p3316_p10 = scmp.ne.s32.totalorder %s3907_s21, %s3315_s14  ;;  %p3322_p12 = scmp.lt.u32.totalorder %s3320_s25, %s3315_s14 }
 0x157   : > { %p3324_p0 = scmp.lt.u32.totalorder %s3315_s14, %s3907_s21 }
 0x158   : > { %p3318_p1 = pnand %p3317_p8, %p3316_p10  ;;  %p3323_p13 = por %p3322_p12, %p3321_p11 }
 0x15a   : > { %p3319_p3 = pneg %p3318_p1  ;;  %p3325_p2 = por %p3324_p0, %p3323_p13 }
 0x15c   : > { %p3326_p5 = pnand %p3325_p2, %p3319_p3 }
 0x15e   : > { %3329 = shalt.err (!%p3326_p5)
}
 0x15f   : > { %s3330_s24 = scalar_lea.vmem %s3909_s29, 128  ;;  %s3491_s26 = smov [#allocation2]  }
 0x160   : > { %p3331_p10 = scmp.ne.s32.totalorder %s3909_s29, %s3330_s24  ;;  %s3335_s0 = sshll.u32 %s3491_s26, 4  ;;  %s3336_s0 = int_to_ptr.vmem [resolvable:$false] %s3335_s0 }
 0x161   : > { %s3337_s18 = scalar_lea.vmem %s3336_s0, 256  ;;  %p3338_p7 = scmp.lt.s32.totalorder %s3909_s29, %s3336_s0 }
 0x162   : > { %p3333_p1 = pnand %p3331_p10, %p3317_p8  ;;  %p3339_p11 = scmp.lt.s32.totalorder %s3337_s18, %s3330_s24 }
 0x164   : > { %p3334_p9 = pneg %p3333_p1  ;;  %p3340_p12 = por %p3339_p11, %p3338_p7 }
 0x166   : > { %p3341_p13 = pnand %p3340_p12, %p3334_p9 }
 0x168   : > { %3344 = shalt.err (!%p3341_p13)
}
 0x169   : > { %2868 = dma.hbm_to_vmem [thread:$0]  (!%p3913_p4), %s3907_s21, 128, %s3909_s29, %s530_s3  }
 0x16a   : > { %s2486_s14 = sshll.u32 %s3473_s16, 4  ;;  %s550_s25 = scalar_lea.vmem [#allocation5], %s3892_s19 }
 0x16b   : > { %s557_s17 = sshll.u32 %s550_s25, 4  ;;  %s4262_s5 = sld [smem:[#allocation40_spill]]  ;;  %s558_s17 = int_to_ptr.vmem [resolvable:$true] %s557_s17 }
 0x16c   : > { %s4263_s24 = sand.u32 1, %s3473_s16  }
 0x16d   : > { %s548_s18 = scalar_lea.sflag [#allocation6], %s4263_s24 }
 0x171   : > { %s3949_s0 = scalar_lea.hbm %s4262_s5, %s2486_s14  ;;  %s3350_s21 = scalar_lea.hbm %s4262_s5, 32 }
 0x172   : > { %s3345_s6 = scalar_lea.hbm %s3949_s0, 16  ;;  %p3351_p0 = scmp.lt.u32.totalorder %s3949_s0, %s4262_s5 }
 0x173   : > { %p3346_p7 = scmp.ne.s32.totalorder %s3949_s0, %s3345_s6  ;;  %p3352_p2 = scmp.lt.u32.totalorder %s3350_s21, %s3345_s6 }
 0x174   : > { %p3354_p10 = scmp.lt.u32.totalorder %s3345_s6, %s3949_s0 }
 0x175   : > { %p3348_p9 = pnand %p3346_p7, %p3317_p8  ;;  %p3353_p5 = por %p3352_p2, %p3351_p0 }
 0x177   : > { %p3349_p3 = pneg %p3348_p9  ;;  %p3355_p1 = por %p3354_p10, %p3353_p5 }
 0x179   : > { %p3356_p11 = pnand %p3355_p1, %p3349_p3 }
 0x17b   : > { %3359 = shalt.err (!%p3356_p11)
}
 0x17c   : > { %s3360_s14 = scalar_lea.vmem %s558_s17, 16  ;;  %s3492_s25 = smov [#allocation5]  }
 0x17d   : > { %p3361_p12 = scmp.ne.s32.totalorder %s558_s17, %s3360_s14  ;;  %s3365_s26 = sshll.u32 %s3492_s25, 4  ;;  %s3366_s26 = int_to_ptr.vmem [resolvable:$false] %s3365_s26 }
 0x17e   : > { %s3367_s24 = scalar_lea.vmem %s3366_s26, 32  ;;  %p3368_p9 = scmp.lt.s32.totalorder %s558_s17, %s3366_s26 }
 0x17f   : > { %p3363_p13 = pnand %p3361_p12, %p3317_p8  ;;  %p3369_p6 = scmp.lt.s32.totalorder %s3367_s24, %s3360_s14 }
 0x181   : > { %p3364_p7 = pneg %p3363_p13  ;;  %p3370_p0 = por %p3369_p6, %p3368_p9 }
 0x183   : > { %p3371_p2 = pnand %p3370_p0, %p3364_p7 }
 0x185   : > { %3374 = shalt.err (!%p3371_p2)
}
 0x186   : > { %2871 = dma.hbm_to_vmem [thread:$0]  (!%p3913_p4), %s3949_s0, 16, %s558_s17, %s548_s18  }
 0x187   : > { %s4264_s6 = sld [smem:[#allocation38_spill]] }
 0x18d   : > { %p4265_p3 = scmp.ne.s32.totalorder %s4264_s6, 0 }
 0x18e   : > { %s3975_s3 = sand.u32 (!%p4265_p3), 1, %s3465_s30   ;;  %p4266_p6 = scmp.ne.s32.totalorder (!%p4265_p3), %s4257_s27, 0 }
 0x18f   : > { %566 = sbr.rel (%p4265_p3) target bundleno = 2870 (0xb36), region = 76  ;;  %s2488_s19 = sshll.u32 (!%p4265_p3), %s3975_s3, 3 }
 0x190   : > { %s569_s21 = scalar_lea.sflag (!%p4265_p3), [#allocation3], %s3975_s3  ;;  %s3981_s4 = scalar_lea.vmem (!%p4265_p3), [#allocation2], %s2488_s19 }
 0x196   : > { %3420 = dma.done.wait (%p4266_p6), %s569_s21, 128  }
 0x197   : > { %3422 = vsyncadd (%p4266_p6), %s569_s21, 4294967168  ;;  %s4267_s22 = sld [smem:[#allocation37_spill]]  ;;  %s580_s18 = scalar_lea.vmem [#allocation5], %s3975_s3 }
 0x19d   : > { %s577_s17 = sand.u32 1, %s4267_s22  }
 0x19e   : > { %s578_s0 = scalar_lea.sflag [#allocation6], %s577_s17 }
 0x19f   : > { %3424 = dma.done.wait (%p4266_p6), %s578_s0, 16  }
 0x1a0   : > { %3426 = vsyncadd (%p4266_p6), %s578_s0, 4294967280  ;;  %p4268_p4 = scmp.eq.s32.totalorder %s4267_s22, 0 }
 0x1a2   : > { %3428 = dma.done.wait (%p4268_p4), [#allocation6], 2048   ;;  %p4269_p8 = pmov %p4268_p4 }
 0x1a3   : > { %p4270_p5 = pmov %p4268_p4 }
 0x1a4   : > { %3430 = vsyncadd (%p4269_p8), [#allocation6], 4294965248 }
 0x1a5   : > { %3432 = dma.done.wait (%p4270_p5), [#allocation9], 576   ;;  %p4271_p10 = pmov %p4268_p4 }
 0x1a6   : > { %p4272_p1 = pmov %p4268_p4 }
 0x1a7   : > { %3434 = vsyncadd (%p4271_p10), [#allocation9], 4294966720 }
 0x1a8   : > { %3436 = dma.done.wait (%p4272_p1), [#allocation12], 32   ;;  %p4273_p11 = pmov %p4272_p1 }
 0x1a9   : > { %p4274_p12 = pmov %p4272_p1 }
 0x1aa   : > { %3438 = vsyncadd (%p4273_p11), [#allocation12], 4294967264 }
 0x1ab   : > { %3440 = dma.done.wait (%p4274_p12), [#allocation15], 528   ;;  %p4275_p13 = pmov %p4272_p1 }
 0x1ac   : > { %p4276_p7 = pmov %p4272_p1 }
 0x1ad   : > { %3442 = vsyncadd (%p4275_p13), [#allocation15], 4294966768 }
 0x1ae   : > { %3444 = dma.done.wait (%p4276_p7), [#allocation18], 1040   ;;  %p4277_p9 = pmov %p4272_p1 }
 0x1af   : > { %p4278_p0 = pmov %p4272_p1 }
 0x1b0   : > { %3446 = vsyncadd (%p4277_p9), [#allocation18], 4294966256 }
 0x1b1   : > { %3448 = dma.done.wait (%p4278_p0), [#allocation21], 32   ;;  %p4279_p2 = pmov %p4278_p0 }
 0x1b2   : > { %p4280_p3 = pmov %p4278_p0 }
 0x1b3   : > { %3450 = vsyncadd (%p4279_p2), [#allocation21], 4294967264 }
 0x1b4   : > { %3452 = dma.done.wait (%p4280_p3), [#allocation24], 16   ;;  %p4281_p6 = pmov %p4278_p0 }
 0x1b5   : > { %v3493_v0 = vmov 0.0|0.0   ;;  %vm3494_vm0 = vmmov 0   ;;  %v3495_v1 = vmov 0.0   ;;  %v679_v2 = vld [vmem:[#allocation7] sm:$0xff]  ;;  %v680_v3 = vld [vmem:[#allocation7 + $0x8] sm:$0xff]  ;;  %v681_v7 = vld [vmem:[#allocation7 + $0x10] sm:$0xff] }
 0x1b6   : > { %3454 = vsyncadd (%p4281_p6), [#allocation24], 4294967280  ;;  %2732 = vmatprep.subr.bf16.mxu0 %v3493_v0  ;;  %2738 = vmatprep.subr.bf16.mxu1 %v3493_v0  ;;  %v683_v4 = vld [vmem:[#allocation7 + $0x20] sm:$0xff]  ;;  %v2733_v5 = vpack.c.bf16 %v680_v3, %v679_v2  ;;  %v684_v6 = vld [vmem:[#allocation7 + $0x28] sm:$0xff]  ;;  %vm723_vm1 = vcmask 261120   ;;  %s3496_s27 = smov 120  }
 0x1b7   : > { %2606 = vmatprep.mubr.msk.f32.mxu0 %vm3494_vm0, %v3495_v1  ;;  %2617 = vmatprep.mubr.msk.f32.mxu1 %vm3494_vm0, %v3495_v1  ;;  %v682_v8 = vld [vmem:[#allocation7 + $0x18] sm:$0xff]  ;;  %v2739_v9 = vpack.c.bf16 %v684_v6, %v683_v4  ;;  %v685_v10 = vld [vmem:[#allocation7 + $0x30] sm:$0xff]  ;;  %v687_v14 = vld [vmem:[#allocation7 + $0x40] sm:$0xff]  ;;  %vm1010_vm2 = vcmask 64512   ;;  %s3497_s29 = smov 112   ;;  %vm2146_vm4 = vcmask 523264  }
 0x1b8   : > { %v686_v11 = vld [vmem:[#allocation7 + $0x38] sm:$0xff]  ;;  %2734 = vmatpush3.bf16.msra.mxu0 %v2733_v5  ;;  %v2736_v12 = vpack.c.bf16 %v682_v8, %v681_v7  ;;  %v688_v15 = vld [vmem:[#allocation7 + $0x48] sm:$0xff]  ;;  %v691_v16 = vld [vmem:[#allocation7 + $0x60] sm:$0xff]  ;;  %s2537_s14 = sshll.u32 %s4267_s22, 7  ;;  %s676_s25 = scalar_lea.vmem [#allocation25], %s2488_s19 }
 0x1b9   : > { %2735 = vmatprep.subr.bf16.mxu0 %v3493_v0  ;;  %2740 = vmatpush3.bf16.msra.mxu1 %v2739_v9  ;;  %v2742_v13 = vpack.c.bf16 %v686_v11, %v685_v10  ;;  %v692_v17 = vld [vmem:[#allocation7 + $0x68] sm:$0xff]  ;;  %v2745_v19 = vpack.c.bf16 %v688_v15, %v687_v14  ;;  %v689_v21 = vld [vmem:[#allocation7 + $0x50] sm:$0xff]  ;;  %v690_v22 = vld [vmem:[#allocation7 + $0x58] sm:$0xff]  ;;  %s2265_s26 = sshll.u32 %s676_s25, 4  ;;  %s4282_s21 = sld [smem:[#allocation46_spill]]  ;;  %s4162_s26 = int_to_ptr.vmem [resolvable:$true] %s2265_s26 }
 0x1ba   : > { %2741 = vmatprep.subr.bf16.mxu1 %v3493_v0  ;;  %v4030_v18 = vld [vmem:[%s3981_s4] sm:$0xff]  ;;  %v2751_v20 = vpack.c.bf16 %v692_v17, %v691_v16  ;;  %v2748_v25 = vpack.c.bf16 %v690_v22, %v689_v21  ;;  %v2502_v27 = vld [vmem:[#allocation8] ss:$0 sm:$0xff]  ;;  %v2503_v29 = vld [vmem:[#allocation8 + $0x1] ss:$0 sm:$0xff]  ;;  %s2252_s17 = scalar_lea.sflag [#allocation4], %s3975_s3 }
 0x1bb   : > { %v693_v23 = vld [vmem:[#allocation7 + $0x70] sm:$0xff]  ;;  %v694_v24 = vld [vmem:[#allocation7 + $0x78] sm:$0xff]  ;;  %v2504_v35 = vld [vmem:[#allocation8 + $0x2] ss:$0 sm:$0xff]  ;;  %s3375_s0 = scalar_lea.vmem %s4162_s26, 128  ;;  %p4283_p8 = scmp.ne.s32.totalorder %s4258_s1, 0 }
 0x1bc   : > { %2737 = vmatpush3.bf16.msra.mxu0 %v2736_v12  ;;  %v2754_v26 = vpack.c.bf16 %v694_v24, %v693_v23  ;;  %v2505_v37 = vld [vmem:[#allocation8 + $0x3] ss:$0 sm:$0xff]  ;;  %v2518_v48 = vld [vmem:[%s580_s18] ss:$0 sm:$0xff]  ;;  %p3376_p4 = scmp.ne.s32.totalorder %s4162_s26, %s3375_s0  ;;  %s3498_s19 = smov [#allocation25]  }
 0x1bd   : > { %2743 = vmatpush3.bf16.msra.mxu1 %v2742_v13  ;;  %2744 = vmatprep.subr.bf16.mxu0 %v3493_v0  ;;  %s3379_s22 = sshll.u32 %s3498_s19, 4  ;;  %s3380_s22 = int_to_ptr.vmem [resolvable:$false] %s3379_s22 }
 0x1be   : > { %2750 = vmatprep.subr.bf16.mxu1 %v3493_v0  ;;  %p3377_p5 = pnand %p3376_p4, %p4283_p8  ;;  %s3381_s18 = scalar_lea.vmem %s3380_s22, 256 }
 0x1bf   : > { %2607 = vmatmul.mubr.msk.f32.vlgmr.msra.gmra.mrb[0].mxu0 %vm723_vm1, %v4030_v18  ;;  %s4160_s4 = scalar_lea.hbm %s4282_s21, %s2537_s14  ;;  %p3382_p1 = scmp.lt.s32.totalorder %s4162_s26, %s3380_s22 }
 0x1c0   : > { %2746 = vmatpush3.bf16.msra.mxu0 %v2745_v19  ;;  %2618 = vmatmul.mubr.msk.f32.vlgmr.msra.gmra.mrb[0].mxu1 %vm723_vm1, %v4030_v18  ;;  %p3378_p10 = pneg %p3377_p5  ;;  %p3383_p11 = scmp.lt.s32.totalorder %s3381_s18, %s3375_s0 }
 0x1c1   : > { %2747 = vmatprep.subr.bf16.mxu0 %v3493_v0  ;;  %2752 = vmatpush3.bf16.msra.mxu1 %v2751_v20 }
 0x1c2   : > { %2628 = vmatprep.mubr.msk.f32.mxu0 %vm3494_vm0, %v3495_v1  ;;  %2753 = vmatprep.subr.bf16.mxu1 %v3493_v0  ;;  %p3384_p12 = por %p3383_p11, %p3382_p1 }
 0x1c3   : > { %2639 = vmatprep.mubr.msk.f32.mxu1 %vm3494_vm0, %v3495_v1 }
 0x1c4   : > { %2749 = vmatpush3.bf16.msra.mxu0 %v2748_v25  ;;  %p3385_p13 = pnand %p3384_p12, %p3378_p10 }
 0x1c5   : > { %2755 = vmatpush3.bf16.msra.mxu1 %v2754_v26  ;;  %2642 = vmatprep.subr.mxu0 %v3495_v1 }
 0x1c6   : > { %2657 = vmatprep.subr.mxu1 %v3495_v1 }
 0x1c7   : > { %2629 = vmatmul.mubr.msk.f32.vlgmr.msra.gmra.mrb[2].mxu0 %vm723_vm1, %v4030_v18 }
 0x1c8   : > { %2640 = vmatmul.mubr.msk.f32.vlgmr.msra.gmra.mrb[2].mxu1 %vm723_vm1, %v4030_v18  ;;  %2644 = vmatprep.mubr.msk.f32.mxu0 %vm3494_vm0, %v3495_v1 }
 0x1c9   : > { %2659 = vmatprep.mubr.msk.f32.mxu1 %vm3494_vm0, %v3495_v1 }
 0x292   : > { %v793_v28 = vpop.f32.mrb[0].mxu0 }
 0x293   : > { %v4054_v30 = vadd.f32 %v2502_v27, %v793_v28  ;;  %v2608_v31 = vpop.f32.mrb[1].mxu0  ;;  %v863_v32 = vpop.f32.mrb[0].mxu1 }
 0x294   : > { %v2619_v33 = vpop.f32.mrb[1].mxu1  ;;  %v4056_v34 = vadd.f32 %v2503_v29, %v863_v32 }
 0x295   : > { %1008 = vrot.lane.b32.xlu0 %v4054_v30, %s3496_s27 }
 0x299   : > { %1086 = vrot.lane.b32.xlu0 %v4056_v34, %s3496_s27 }
 0x29a   : > { %v933_v36 = vpop.f32.mrb[2].mxu0 }
 0x29b   : > { %v4060_v38 = vadd.f32 %v2504_v35, %v933_v36  ;;  %v2630_v39 = vpop.f32.mrb[3].mxu0  ;;  %v1003_v40 = vpop.f32.mrb[2].mxu1 }
 0x29c   : > { %v2641_v41 = vpop.f32.mrb[3].mxu1  ;;  %v4062_v42 = vadd.f32 %v2505_v37, %v1003_v40 }
 0x29d   : > { %1163 = vrot.lane.b32.xlu1 %v4060_v38, %s3496_s27 }
 0x2a1   : > { %1240 = vrot.lane.b32.xlu1 %v4062_v42, %s3496_s27 }
 0x307   : > { %v1009_v43 = vpop.permute.xlu0 %1008 }
 0x308   : > { %2643 = vmatpush3.xpose.msk.msra.mxu0 %vm1010_vm2, %v1009_v43  ;;  %v1678_v43 = vld [vmem:[#allocation10] sm:$0xff] }
 0x309   : > { %2647 = vmatprep.subr.mxu0 %v3495_v1 }
 0x30b   : > { %2645 = vmatmul.mubr.msk.f32.vlgmr.msra.gmra.mrb[4].mxu0 %vm1010_vm2, %v4054_v30  ;;  %v1087_v44 = vpop.permute.xlu0 %1086 }
 0x30c   : > { %2648 = vmatpush3.xpose.msk.msra.mxu0 %vm1010_vm2, %v1087_v44  ;;  %2649 = vmatprep.mubr.msk.f32.mxu0 %vm3494_vm0, %v3495_v1  ;;  %v1679_v44 = vld [vmem:[#allocation10 + $0x8] sm:$0xff] }
 0x30d   : > { %2652 = vmatprep.subr.mxu0 %v3495_v1 }
 0x30f   : > { %2650 = vmatmul.mubr.msk.f32.vlgmr.msra.gmra.mrb[6].mxu0 %vm1010_vm2, %v4056_v34  ;;  %v1164_v45 = vpop.permute.xlu1 %1163 }
 0x310   : > { %2653 = vmatpush3.xpose.msk.msra.mxu0 %vm1010_vm2, %v1164_v45  ;;  %2654 = vmatprep.mubr.msk.f32.mxu0 %vm3494_vm0, %v3495_v1  ;;  %v1680_v45 = vld [vmem:[#allocation10 + $0x10] sm:$0xff] }
 0x311   : > { %2662 = vmatprep.subr.mxu0 %v3495_v1 }
 0x313   : > { %2655 = vmatmul.mubr.msk.f32.vlgmr.msra.gmra.mrb[8].mxu0 %vm1010_vm2, %v4060_v38  ;;  %v1241_v46 = vpop.permute.xlu1 %1240 }
 0x314   : > { %2658 = vmatpush3.xpose.msk.msra.mxu1 %vm1010_vm2, %v1241_v46  ;;  %2664 = vmatprep.mubr.msk.f32.mxu0 %vm3494_vm0, %v3495_v1 }
 0x315   : > { %2667 = vmatprep.subr.mxu1 %v3495_v1 }
 0x317   : > { %2660 = vmatmul.mubr.msk.f32.vlgmr.msra.gmra.mrb[4].mxu1 %vm1010_vm2, %v4062_v42 }
 0x318   : > { %2669 = vmatprep.mubr.msk.f32.mxu1 %vm3494_vm0, %v3495_v1 }
 0x3de   : > { %v1081_v47 = vpop.f32.mrb[4].mxu0 }
 0x3df   : > { %v1316_v49 = vmul.f32 0.35355338, %v1081_v47  ;;  %v2646_v50 = vpop.f32.mrb[5].mxu0 }
 0x3e1   : > { %v1326_v51 = vadd.f32 %v2518_v48, %v1316_v49 }
 0x3e2   : > { %v1158_v52 = vpop.f32.mrb[6].mxu0 }
 0x3e3   : > { %v1317_v53 = vmul.f32 0.35355338, %v1158_v52  ;;  %v2651_v54 = vpop.f32.mrb[7].mxu0  ;;  %v1330_v55 = vsel %vm1010_vm2, %v1326_v51, -inf }
 0x3e4   : > { %1331 = vmax.xlane.f32.xlu0 %v1330_v55 }
 0x3e5   : > { %v1327_v56 = vadd.f32 %v2518_v48, %v1317_v53 }
 0x3e6   : > { %v1235_v57 = vpop.f32.mrb[8].mxu0 }
 0x3e7   : > { %v1318_v58 = vmul.f32 0.35355338, %v1235_v57  ;;  %v2656_v59 = vpop.f32.mrb[9].mxu0  ;;  %v1333_v60 = vsel %vm1010_vm2, %v1327_v56, -inf }
 0x3e8   : > { %1334 = vmax.xlane.f32.xlu1 %v1333_v60 }
 0x3e9   : > { %v1328_v61 = vadd.f32 %v2518_v48, %v1318_v58 }
 0x3ea   : > { %v1312_v62 = vpop.f32.mrb[4].mxu1 }
 0x3eb   : > { %v1319_v63 = vmul.f32 0.35355338, %v1312_v62  ;;  %v2661_v2 = vpop.f32.mrb[5].mxu1  ;;  %v1336_v3 = vsel %vm1010_vm2, %v1328_v61, -inf }
 0x3ec   : > { %1337 = vmax.xlane.f32.xlu0 %v1336_v3 }
 0x3ed   : > { %v1329_v4 = vadd.f32 %v2518_v48, %v1319_v63  ;;  %v1681_v48 = vld [vmem:[#allocation10 + $0x18] sm:$0xff] }
 0x3ef   : > { %v1339_v5 = vsel %vm1010_vm2, %v1329_v4, -inf }
 0x3f0   : > { %1340 = vmax.xlane.f32.xlu0 %v1339_v5 }
 0x3f9   : > { %1374 = vrot.lane.b32.xlu1 %v4054_v30, %s3497_s29 }
 0x471   : > { %v1332_v6 = vpop.xlane.xlu0 %1331 }
 0x472   : > { %v1342_v7 = vsub.f32 %v1326_v51, %v1332_v6  ;;  %v2527_v6 = vld [vmem:[#allocation11] ss:$0 sm:$0xff] }
 0x474   : > { %v1346_v8 = vmul.f32 1.442695, %v1342_v7 }
 0x475   : > { %v1335_v9 = vpop.xlane.xlu1 %1334 }
 0x476   : > { %2955 = vpow2.f32 %v1346_v8  ;;  %v1343_v10 = vsub.f32 %v1327_v56, %v1335_v9 }
 0x478   : > { %v1348_v11 = vmul.f32 1.442695, %v1343_v10 }
 0x479   : > { %v1375_v12 = vpop.permute.xlu1 %1374  ;;  %v1338_v13 = vpop.xlane.xlu0 %1337 }
 0x47a   : > { %2957 = vpow2.f32 %v1348_v11  ;;  %v1344_v14 = vsub.f32 %v1328_v61, %v1338_v13  ;;  %2663 = vmatpush3.msra.mxu0 %v1375_v12 }
 0x47b   : > { %2672 = vmatprep.subr.mxu0 %v3495_v1 }
 0x47c   : > { %v1350_v15 = vmul.f32 1.442695, %v1344_v14 }
 0x47d   : > { %v1341_v16 = vpop.xlane.xlu0 %1340 }
 0x47e   : > { %2959 = vpow2.f32 %v1350_v15  ;;  %v1345_v17 = vsub.f32 %v1329_v4, %v1341_v16  ;;  %v2020_v16 = vld [vmem:[#allocation16] sm:$0xff] }
 0x480   : > { %v2956_v19 = vpop.eup %2955  ;;  %v1352_v20 = vmul.f32 1.442695, %v1345_v17  ;;  %v2021_v17 = vld [vmem:[#allocation16 + $0x8] sm:$0xff] }
 0x481   : > { %v1354_v21 = vsel %vm1010_vm2, %v2956_v19, 0.0 }
 0x482   : > { %2961 = vpow2.f32 %v1352_v20  ;;  %1355 = vadd.xlane.f32.xlu1 %v1354_v21  ;;  %v2022_v20 = vld [vmem:[#allocation16 + $0x10] sm:$0xff]  ;;  %v2023_v21 = vld [vmem:[#allocation16 + $0x18] sm:$0xff] }
 0x484   : > { %v2958_v22 = vpop.eup %2957 }
 0x485   : > { %v1357_v23 = vsel %vm1010_vm2, %v2958_v22, 0.0 }
 0x486   : > { %1358 = vadd.xlane.f32.xlu0 %v1357_v23 }
 0x488   : > { %v2960_v24 = vpop.eup %2959 }
 0x489   : > { %v1360_v25 = vsel %vm1010_vm2, %v2960_v24, 0.0 }
 0x48a   : > { %1361 = vadd.xlane.f32.xlu1 %v1360_v25 }
 0x48c   : > { %v2962_v26 = vpop.eup %2961 }
 0x48d   : > { %v1363_v27 = vsel %vm1010_vm2, %v2962_v26, 0.0 }
 0x48e   : > { %1364 = vadd.xlane.f32.xlu0 %v1363_v27 }
 0x49b   : > { %1526 = vrot.lane.b32.xlu1 %v4060_v38, %s3497_s29 }
 0x49f   : > { %1602 = vrot.lane.b32.xlu1 %v4062_v42, %s3497_s29 }
 0x4a4   : > { %1450 = vrot.lane.b32.xlu0 %v4056_v34, %s3497_s29 }
 0x50f   : > { %v1356_v28 = vpop.xlane.xlu1 %1355 }
 0x510   : > { %2963 = vrcp.f32 %v1356_v28  ;;  %v2529_v28 = vld [vmem:[#allocation14] ss:$0 sm:$0xff] }
 0x513   : > { %v1359_v29 = vpop.xlane.xlu0 %1358 }
 0x514   : > { %2965 = vrcp.f32 %v1359_v29 }
 0x517   : > { %v1362_v30 = vpop.xlane.xlu1 %1361 }
 0x518   : > { %2967 = vrcp.f32 %v1362_v30 }
 0x51a   : > { %v2964_v31 = vpop.eup %2963 }
 0x51b   : > { %v1370_v32 = vmul.f32 %v2964_v31, %v2956_v19  ;;  %v1527_v33 = vpop.permute.xlu1 %1526  ;;  %v1365_v35 = vpop.xlane.xlu0 %1364  ;;  %v2757_v19 = vpack.c.bf16 %v2021_v17, %v2020_v16  ;;  %v2131_v31 = vld [vmem:[#allocation19] sm:$0xff] }
 0x51c   : > { %2969 = vrcp.f32 %v1365_v35  ;;  %v2133_v35 = vld [vmem:[#allocation19 + $0x10] sm:$0xff] }
 0x51d   : > { %2665 = vmatmul.mubr.msk.f32.vlgmr.msra.gmra.mrb[10].mxu0 %vm1010_vm2, %v1370_v32  ;;  %v2132_v32 = vld [vmem:[#allocation19 + $0x8] sm:$0xff] }
 0x51e   : > { %v2966_v36 = vpop.eup %2965  ;;  %2673 = vmatpush3.msra.mxu0 %v1527_v33  ;;  %2674 = vmatprep.mubr.msk.f32.mxu0 %vm3494_vm0, %v3495_v1  ;;  %v2763_v33 = vpack.c.bf16 %v2132_v32, %v2131_v31 }
 0x51f   : > { %v1371_v37 = vmul.f32 %v2966_v36, %v2958_v22  ;;  %v1451_v34 = vpop.permute.xlu0 %1450  ;;  %2682 = vmatprep.subr.mxu0 %v3495_v1  ;;  %v1603_v38 = vpop.permute.xlu1 %1602  ;;  %v2760_v22 = vpack.c.bf16 %v2023_v21, %v2022_v20  ;;  %v2134_v36 = vld [vmem:[#allocation19 + $0x18] sm:$0xff] }
 0x520   : > { %2668 = vmatpush3.msra.mxu1 %v1451_v34  ;;  %v2135_v34 = vld [vmem:[#allocation19 + $0x20] sm:$0xff] }
 0x521   : > { %2670 = vmatmul.mubr.msk.f32.vlgmr.msra.gmra.mrb[6].mxu1 %vm1010_vm2, %v1371_v37  ;;  %2677 = vmatprep.subr.mxu1 %v3495_v1  ;;  %v2766_v37 = vpack.c.bf16 %v2134_v36, %v2133_v35 }
 0x522   : > { %v2968_v39 = vpop.eup %2967  ;;  %2678 = vmatpush3.msra.mxu1 %v1603_v38  ;;  %2679 = vmatprep.mubr.msk.f32.mxu1 %vm3494_vm0, %v3495_v1  ;;  %v2136_v38 = vld [vmem:[#allocation19 + $0x28] sm:$0xff] }
 0x523   : > { %v1372_v40 = vmul.f32 %v2968_v39, %v2960_v24  ;;  %2687 = vmatprep.subr.mxu1 %v3495_v1  ;;  %v2769_v39 = vpack.c.bf16 %v2136_v38, %v2135_v34 }
 0x525   : > { %2675 = vmatmul.mubr.msk.f32.vlgmr.msra.gmra.mrb[12].mxu0 %vm1010_vm2, %v1372_v40  ;;  %v2137_v40 = vld [vmem:[#allocation19 + $0x30] sm:$0xff] }
 0x526   : > { %v2970_v41 = vpop.eup %2969  ;;  %2684 = vmatprep.mubr.msk.f32.mxu0 %vm3494_vm0, %v3495_v1  ;;  %2683 = vmatpush3.msra.mxu0 %v1678_v43  ;;  %v2530_v43 = vld [vmem:[#allocation17] ss:$0 sm:$0xff] }
 0x527   : > { %v1373_v42 = vmul.f32 %v2970_v41, %v2962_v26  ;;  %2692 = vmatprep.subr.mxu0 %v3495_v1  ;;  %v2528_v26 = vld [vmem:[#allocation13] ss:$0 sm:$0xff] }
 0x528   : > { %v2138_v41 = vld [vmem:[#allocation19 + $0x38] sm:$0xff] }
 0x529   : > { %2680 = vmatmul.mubr.msk.f32.vlgmr.msra.gmra.mrb[8].mxu1 %vm1010_vm2, %v1373_v42  ;;  %v2772_v42 = vpack.c.bf16 %v2138_v41, %v2137_v40 }
 0x52a   : > { %2689 = vmatprep.mubr.msk.f32.mxu1 %vm3494_vm0, %v3495_v1  ;;  %2688 = vmatpush3.msra.mxu1 %v1679_v44 }
 0x52b   : > { %2697 = vmatprep.subr.mxu1 %v3495_v1 }
 0x5f0   : > { %v1446_v46 = vpop.f32.mrb[10].mxu0 }
 0x5f1   : > { %v2666_v47 = vpop.f32.mrb[11].mxu0  ;;  %2685 = vmatmul.mubr.msk.f32.vlgmr.msra.gmra.mrb[14].mxu0 %vm1010_vm2, %v1446_v46 }
 0x5f2   : > { %2693 = vmatpush3.msra.mxu0 %v1680_v45  ;;  %2694 = vmatprep.mubr.msk.f32.mxu0 %vm3494_vm0, %v3495_v1 }
 0x5f3   : > { %2756 = vmatprep.subr.bf16.mxu0 %v3493_v0 }
 0x5f4   : > { %v1522_v49 = vpop.f32.mrb[6].mxu1 }
 0x5f5   : > { %v2671_v50 = vpop.f32.mrb[7].mxu1  ;;  %2690 = vmatmul.mubr.msk.f32.vlgmr.msra.gmra.mrb[10].mxu1 %vm1010_vm2, %v1522_v49 }
 0x5f6   : > { %2698 = vmatpush3.msra.mxu1 %v1681_v48  ;;  %2699 = vmatprep.mubr.msk.f32.mxu1 %vm3494_vm0, %v3495_v1 }
 0x5f7   : > { %2762 = vmatprep.subr.bf16.mxu1 %v3493_v0 }
 0x5f8   : > { %v1598_v51 = vpop.f32.mrb[12].mxu0 }
 0x5f9   : > { %v2676_v52 = vpop.f32.mrb[13].mxu0  ;;  %2695 = vmatmul.mubr.msk.f32.vlgmr.msra.gmra.mrb[16].mxu0 %vm1010_vm2, %v1598_v51 }
 0x5fa   : > { %2710 = vmatprep.mubr.msk.f32.mxu0 %vm3494_vm0, %v3495_v1  ;;  %2758 = vmatpush3.bf16.msra.mxu0 %v2757_v19 }
 0x5fb   : > { %2759 = vmatprep.subr.bf16.mxu0 %v3493_v0 }
 0x5fc   : > { %v1674_v53 = vpop.f32.mrb[8].mxu1 }
 0x5fd   : > { %v2681_v54 = vpop.f32.mrb[9].mxu1  ;;  %2700 = vmatmul.mubr.msk.f32.vlgmr.msra.gmra.mrb[12].mxu1 %vm1010_vm2, %v1674_v53 }
 0x5fe   : > { %2729 = vmatprep.mubr.msk.f32.mxu1 %vm3494_vm0, %v3495_v1  ;;  %2761 = vmatpush3.bf16.msra.mxu0 %v2760_v22 }
 0x5ff   : > { %2764 = vmatpush3.bf16.msra.mxu1 %v2763_v33 }
 0x600   : > { %2765 = vmatprep.subr.bf16.mxu1 %v3493_v0 }
 0x603   : > { %2767 = vmatpush3.bf16.msra.mxu1 %v2766_v37 }
 0x604   : > { %2768 = vmatprep.subr.bf16.mxu1 %v3493_v0 }
 0x607   : > { %2770 = vmatpush3.bf16.msra.mxu1 %v2769_v39 }
 0x608   : > { %2771 = vmatprep.subr.bf16.mxu1 %v3493_v0 }
 0x60b   : > { %2773 = vmatpush3.bf16.msra.mxu1 %v2772_v42 }
 0x6c4   : > { %v1751_v55 = vpop.f32.mrb[14].mxu0 }
 0x6c5   : > { %v2686_v56 = vpop.f32.mrb[15].mxu0  ;;  %v1974_v58 = vsel %vm723_vm1, %v1751_v55, 0.0 }
 0x6c8   : > { %v1824_v57 = vpop.f32.mrb[10].mxu1 }
 0x6c9   : > { %v1975_v59 = vsel %vm723_vm1, %v1824_v57, 0.0  ;;  %v2691_v60 = vpop.f32.mrb[11].mxu1 }
 0x6ca   : > { %v1976_v61 = vadd.f32 %v1975_v59, %v1974_v58 }
 0x6cc   : > { %v1897_v62 = vpop.f32.mrb[16].mxu0 }
 0x6cd   : > { %v1977_v63 = vsel %vm723_vm1, %v1897_v62, 0.0  ;;  %v2696_v2 = vpop.f32.mrb[17].mxu0 }
 0x6ce   : > { %v1978_v3 = vadd.f32 %v1977_v63, %v1976_v61 }
 0x6d0   : > { %v1970_v4 = vpop.f32.mrb[12].mxu1 }
 0x6d1   : > { %v1979_v5 = vsel %vm723_vm1, %v1970_v4, 0.0  ;;  %v2701_v7 = vpop.f32.mrb[13].mxu1 }
 0x6d2   : > { %v1980_v1 = vadd.f32 %v1979_v5, %v1978_v3 }
 0x6d4   : > { %v1988_v8 = vadd.f32 %v2527_v6, %v1980_v1 }
 0x6d6   : > { %v1989_v9 = vadd.f32 %v1988_v8, %v4030_v18  ;;  %v2532_v8 = vld [vmem:[#allocation20] ss:$0 sm:$0xff] }
 0x6d8   : > { %v1992_v10 = vsel %vm723_vm1, %v1989_v9, 0.0 }
 0x6d9   : > { %1993 = vadd.xlane.f32.xlu0 %v1992_v10 }
 0x766   : > { %v1994_v11 = vpop.xlane.xlu0 %1993 }
 0x767   : > { %v1996_v12 = vmul.f32 0.03125, %v1994_v11 }
 0x769   : > { %v1997_v13 = vsub.f32 %v1989_v9, %v1996_v12 }
 0x76b   : > { %v1998_v14 = vmul.f32 %v1997_v13, %v1997_v13 }
 0x76d   : > { %v1999_v15 = vsel %vm723_vm1, %v1998_v14, 0.0 }
 0x76e   : > { %2000 = vadd.xlane.f32.xlu1 %v1999_v15 }
 0x7fb   : > { %v2001_v18 = vpop.xlane.xlu1 %2000 }
 0x7fc   : > { %v2002_v23 = vmul.f32 0.03125, %v2001_v18 }
 0x7fe   : > { %v2003_v24 = vadd.f32 1e-12, %v2002_v23  ;;  %v2534_v23 = vld [vmem:[#allocation22] ss:$0 sm:$0xff] }
 0x800   : > { %2971 = vrsqrt.f32 %v2003_v24 }
 0x80a   : > { %v2972_v25 = vpop.eup %2971 }
 0x80b   : > { %v2005_v27 = vmul.f32 %v2972_v25, %v1997_v13  ;;  %v2535_v25 = vld [vmem:[#allocation23] ss:$0 sm:$0xff] }
 0x80d   : > { %v2012_v29 = vmul.f32 %v2528_v26, %v2005_v27 }
 0x80f   : > { %v2019_v30 = vadd.f32 %v2529_v28, %v2012_v29 }
 0x811   : > { %2711 = vmatmul.mubr.msk.f32.vlgmr.msra.gmra.mrb[18].mxu0 %vm723_vm1, %v2019_v30 }
 0x8e4   : > { %v2100_v44 = vpop.f32.mrb[18].mxu0 }
 0x8e5   : > { %v2101_v45 = vadd.f32 %v2530_v43, %v2100_v44  ;;  %v2712_v46 = vpop.f32.mrb[19].mxu0 }
 0x8e7   : > { %v2105_v47 = vmul.f32 0.70710677, %v2101_v45  ;;  %v2104_v6 = vmul.f32 0.5, %v2101_v45 }
 0x8e9   : > { %v2106_v48 = vand.u32 2147483647, %v2105_v47  ;;  %vm2126_vm3 = vcmp.ge.f32.partialorder %v2105_v47, 0.0 }
 0x8eb   : > { %v2107_v49 = vmul.f32 0.3275911, %v2106_v48  ;;  %v2120_v51 = vsub.f32 0.0, %v2106_v48 }
 0x8ed   : > { %v2108_v50 = vadd.f32 1.0, %v2107_v49  ;;  %v2121_v53 = vmul.f32 %v2120_v51, %v2106_v48 }
 0x8ef   : > { %2973 = vrcp.f32 %v2108_v50  ;;  %v2122_v56 = vmul.f32 1.442695, %v2121_v53 }
 0x8f1   : > { %2975 = vpow2.f32 %v2122_v56 }
 0x8f9   : > { %v2974_v52 = vpop.eup %2973 }
 0x8fa   : > { %v2111_v54 = vmul.f32 1.0614054, %v2974_v52 }
 0x8fb   : > { %v2976_v63 = vpop.eup %2975 }
 0x8fc   : > { %v2112_v55 = vadd.f32 -1.4531521, %v2111_v54 }
 0x8fe   : > { %v2113_v0 = vmul.f32 %v2974_v52, %v2112_v55 }
 0x900   : > { %v2114_v57 = vadd.f32 1.4214138, %v2113_v0 }
 0x902   : > { %v2115_v58 = vmul.f32 %v2974_v52, %v2114_v57 }
 0x904   : > { %v2116_v59 = vadd.f32 -0.28449672, %v2115_v58 }
 0x906   : > { %v2117_v60 = vmul.f32 %v2974_v52, %v2116_v59 }
 0x908   : > { %v2118_v61 = vadd.f32 0.2548296, %v2117_v60 }
 0x90a   : > { %v2119_v62 = vmul.f32 %v2974_v52, %v2118_v61 }
 0x90c   : > { %v2124_v2 = vmul.f32 %v2976_v63, %v2119_v62 }
 0x90e   : > { %v2125_v3 = vsub.f32 1.0, %v2124_v2 }
 0x910   : > { %v2127_v4 = vsub.f32 0.0, %v2125_v3 }
 0x912   : > { %v2128_v5 = vsel %vm2126_vm3, %v2125_v3, %v2127_v4 }
 0x913   : > { %v2129_v7 = vadd.f32 1.0, %v2128_v5 }
 0x915   : > { %v2130_v1 = vmul.f32 %v2129_v7, %v2104_v6 }
 0x917   : > { %2730 = vmatmul.mubr.msk.f32.vlgmr.msra.gmra.mrb[14].mxu1 %vm2146_vm4, %v2130_v1 }
 0x9ea   : > { %v2216_v9 = vpop.f32.mrb[14].mxu1 }
 0x9eb   : > { %v2217_v10 = vadd.f32 %v2532_v8, %v2216_v9  ;;  %v2731_v11 = vpop.f32.mrb[15].mxu1 }
 0x9ed   : > { %v2220_v12 = vadd.f32 %v2217_v10, %v2019_v30 }
 0x9ef   : > { %v2223_v13 = vsel %vm723_vm1, %v2220_v12, 0.0 }
 0x9f0   : > { %2224 = vadd.xlane.f32.xlu0 %v2223_v13 }
 0xa7d   : > { %v2225_v14 = vpop.xlane.xlu0 %2224 }
 0xa7e   : > { %v2226_v15 = vmul.f32 0.03125, %v2225_v14 }
 0xa80   : > { %v2227_v16 = vsub.f32 %v2220_v12, %v2226_v15 }
 0xa82   : > { %v2228_v17 = vmul.f32 %v2227_v16, %v2227_v16 }
 0xa84   : > { %v2229_v19 = vsel %vm723_vm1, %v2228_v17, 0.0 }
 0xa85   : > { %2230 = vadd.xlane.f32.xlu0 %v2229_v19 }
 0xb12   : > { %v2231_v20 = vpop.xlane.xlu0 %2230 }
 0xb13   : > { %v2232_v21 = vmul.f32 0.03125, %v2231_v20 }
 0xb15   : > { %v2233_v22 = vadd.f32 1e-12, %v2232_v21 }
 0xb17   : > { %2977 = vrsqrt.f32 %v2233_v22 }
 0xb21   : > { %v2978_v18 = vpop.eup %2977 }
 0xb22   : > { %v2235_v24 = vmul.f32 %v2978_v18, %v2227_v16 }
 0xb24   : > { %v2242_v26 = vmul.f32 %v2534_v23, %v2235_v24 }
 0xb26   : > { %v2249_v27 = vadd.f32 %v2535_v25, %v2242_v26 }
 0xb28   : > { %2250 = vst.msk [vmem:[%s676_s25] sm:$0xff] %vm723_vm1, %v2249_v27 }
 0xb29   : > { %3388 = shalt.err (!%p3385_p13)
}
 0xb2a   : > { %s3389_s3 = scalar_lea.hbm %s4160_s4, 128  ;;  %s3393_s14 = scalar_lea.hbm %s4282_s21, 256 }
 0xb2b   : > { %p3390_p7 = scmp.ne.s32.totalorder %s4160_s4, %s3389_s3  ;;  %p3394_p2 = scmp.lt.u32.totalorder %s4160_s4, %s4282_s21 }
 0xb2c   : > { %p3395_p3 = scmp.lt.u32.totalorder %s3393_s14, %s3389_s3  ;;  %p3397_p4 = scmp.lt.u32.totalorder %s3389_s3, %s4160_s4 }
 0xb2d   : > { %p3391_p9 = pnand %p3390_p7, %p4283_p8 }
 0xb2e   : > { %p3396_p6 = por %p3395_p3, %p3394_p2 }
 0xb2f   : > { %p3392_p0 = pneg %p3391_p9 }
 0xb30   : > { %p3398_p5 = por %p3397_p4, %p3396_p6 }
 0xb32   : > { %p3399_p10 = pnand %p3398_p5, %p3392_p0 }
 0xb34   : > { %3402 = shalt.err (!%p3399_p10)
}
 0xb35   : > { %2826 = dma.vmem_to_hbm [thread:$0]  (%p4283_p8), %s4162_s26, 128, %s4160_s4, %s2252_s17  }
 0xb36 PF: > { %s4284_s6 = sld [smem:[#allocation36_spill]]  ;;  %p4285_p1 = scmp.ne.s32.totalorder %s4259_s28, 0 }
 0xb37   : > { %p4286_p11 = scmp.ge.s32.totalorder %s3473_s16, 2 }
 0xb39   : > { %p2873_p12 = pnand %p4286_p11, %p4285_p1 }
 0xb3c   : > { %s2277_s0 = sand.u32 1, %s4284_s6  }
 0xb3d   : > { %s2278_s19 = scalar_lea.sflag [#allocation4], %s2277_s0 }
 0xb3e   : > { %3456 = dma.done.wait (!%p2873_p12), %s2278_s19, 128  }
 0xb3f   : > { %3458 = vsyncadd (!%p2873_p12), %s2278_s19, 4294967168  ;;  %p36_p13 = scmp.ge.s32.totalorder %s3866_s23, 4   ;;  %s4287_s29 = smov %s3465_s30 }
 0xb40   : > { %s4288_s30 = smov %s3469_s15  ;;  %s4289_s15 = smov %s3877_s2 }
 0xb41   : > { %s4290_s16 = smov %s3866_s23  ;;  %38 = sbr.rel (!%p36_p13) target bundleno = 22 (0x16), region = 182 }
 0xb48   :  { %2283 = vsyncpa [#allocation3], 1 }
 0xb49   :  { %2285 = vsyncpa [#allocation3 + $0x1], 1 }
 0xb4a   :  { %2286 = vsyncpa [#allocation6], 1 }
 0xb4b   :  { %2288 = vsyncpa [#allocation6 + $0x1], 1 }
 0xb4c   :  { %2289 = vsyncpa [#allocation9], 1 }
 0xb4d   :  { %2290 = vsyncpa [#allocation12], 1 }
 0xb4e   :  { %2291 = vsyncpa [#allocation15], 1 }
 0xb4f   :  { %2292 = vsyncpa [#allocation18], 1 }
 0xb50   :  { %2293 = vsyncpa [#allocation21], 1 }
 0xb51   :  { %2294 = vsyncpa [#allocation24], 1 }
 0xb52   :  { %2295 = vsyncpa [#allocation4], 1 }
 0xb53   :  { %2297 = vsyncpa [#allocation4 + $0x1], 1 }

</bundles_post_ra>
